<compile_context>
chip_gen: v7x
topology: tpu7x:2x2x1
jax: 0.10.0
libtpu: 0.0.40
codegen_flags: <defaults>
</compile_context>

<pallas_src>
import functools

import jax
import jax.numpy as jnp
from jax.experimental import pallas as pl
from jax.experimental.pallas import tpu as pltpu


# ----------------------------------------------------------------------------
# Pass 1: conv (im2col single MXU matmul) + per-batch partial BN statistics.
# ----------------------------------------------------------------------------
def _conv_stats_kernel(x_ref, w_ref, conv_ref, stats_ref, xpad_ref,
                       *, stride, pad, ksize):
    """One batch element per grid step.

    x_ref:     (H, W, Cin)         unpadded input (N squeezed by BlockSpec)
    w_ref:     (KH*KW*Cin, Cpad)   weight matrix, Cout zero-padded to Cpad
    conv_ref:  (Cout, Hout*Wout)   conv output: channels on sublanes,
                                   flattened spatial on lanes (lane-dense,
                                   no channel padding in HBM)
    stats_ref: (Cout, 2)           col 0 = sum, col 1 = sum of squares
    xpad_ref:  (Hp, Wp, Cin)       VMEM scratch for the zero-padded input
    """
    h, w, cin = x_ref.shape
    cout, m = conv_ref.shape
    kh_sz, kw_sz = ksize
    hp, wp, _ = xpad_ref.shape
    hout = (h + 2 * pad - kh_sz) // stride + 1
    wout = (w + 2 * pad - kw_sz) // stride + 1

    if pad > 0:
        # Zero only the halo strips, then write the interior exactly once
        # (feedback: the old full zero-fill + full overwrite doubled vst
        # traffic per step).  Stronger form would DMA x straight into the
        # interior (memory_space=pl.ANY + make_async_copy); not needed at
        # these sizes.
        zdt = xpad_ref.dtype
        xpad_ref[:pad, :, :] = jnp.zeros((pad, wp, cin), zdt)
        xpad_ref[pad + h:, :, :] = jnp.zeros((hp - pad - h, wp, cin), zdt)
        xpad_ref[pad:pad + h, :pad, :] = jnp.zeros((h, pad, cin), zdt)
        xpad_ref[pad:pad + h, pad + w:, :] = jnp.zeros((h, wp - pad - w, cin), zdt)
        xpad_ref[pad:pad + h, pad:pad + w, :] = x_ref[...]
        xp = xpad_ref[...]
    else:
        xp = x_ref[...]

    # im2col: one shifted window per tap, concatenated on the channel (lane)
    # axis so the conv is a single matmul with K = KH*KW*Cin.
    pieces = []
    for kh in range(kh_sz):
        for kw in range(kw_sz):
            pieces.append(xp[kh:kh + stride * hout:stride,
                             kw:kw + stride * wout:stride, :])
    kdim = kh_sz * kw_sz * cin
    patches = jnp.concatenate(pieces, axis=-1).reshape(m, kdim)

    # Single MXU matmul, f32 accumulation.  Cpad only exists in VMEM.
    acc = jnp.dot(patches, w_ref[...], preferred_element_type=jnp.float32)  # (M, Cpad)

    # Transpose on the (otherwise idle) XLU so the HBM intermediate is
    # (Cout, M): no channel padding reaches HBM and the final NCHW output is
    # a free reshape in the wrapper (no output transpose).
    y_t = acc.T[:cout, :]                                    # (Cout, M) f32
    conv_ref[...] = y_t.astype(conv_ref.dtype)

    # Per-channel partial sums for BN batch stats from small (Cout, M) temps
    # (avoids the (M, Cpad) acc*acc temp flagged for v7x VMEM pressure).
    ssum = jnp.sum(y_t, axis=1, keepdims=True)               # (Cout, 1)
    ssq = jnp.sum(y_t * y_t, axis=1, keepdims=True)          # (Cout, 1)
    stats_ref[...] = jnp.concatenate([ssum, ssq], axis=1)    # (Cout, 2)


# ----------------------------------------------------------------------------
# Pass 2: apply precomputed per-row scale/shift + ReLU (pure FMA, lane-dense).
# ----------------------------------------------------------------------------
def _bn_act_kernel(y_ref, scale_ref, shift_ref, out_ref):
    """y_ref: (TR, M); scale/shift: (TR, 1) broadcast along lanes."""
    out_ref[...] = jnp.maximum(
        y_ref[...] * scale_ref[...] + shift_ref[...], 0.0
    ).astype(out_ref.dtype)


def _pick_tile_rows(rows, bytes_per_row, budget_bytes):
    """Largest row tile dividing `rows` that is a multiple of 8 (or the full
    extent) and keeps one (in + out) block under `budget_bytes`."""
    if rows * bytes_per_row <= budget_bytes:
        return rows
    limit = min(rows, max(8, budget_bytes // bytes_per_row))
    limit -= limit % 8
    for cand in range(limit, 7, -8):
        if rows % cand == 0:
            return cand
    return rows


# ----------------------------------------------------------------------------
# Wrapper: NCHW in / NCHW out, matching the PyTorch module.
# ----------------------------------------------------------------------------
def conv_bn_act(x_nchw, w_oihw, gamma, beta, *, stride=1, eps=1e-5):
    n, cin, h, w = x_nchw.shape
    cout, cin_w, kh, kw = w_oihw.shape
    assert cin == cin_w
    pad = kh // 2                     # PyTorch module: padding = kernel_size // 2
    hout = (h + 2 * pad - kh) // stride + 1
    wout = (w + 2 * pad - kw) // stride + 1
    hp, wp = h + 2 * pad, w + 2 * pad
    m = hout * wout
    kdim = kh * kw * cin
    # MXU output width: 128 for small Cout; 256-aligned when Cout > 128 so
    # the 256-wide MXUs on v6e/v7x are filled.  VMEM-only padding.
    cpad = 128 if cout <= 128 else ((cout + 255) // 256) * 256

    # Layout glue (input side only): NCHW -> NHWC so channels sit on lanes
    # for the im2col matmul.  The output side needs no transpose (pass 1
    # already emits the (Cout, Hout*Wout) layout).
    x_nhwc = jnp.transpose(x_nchw, (0, 2, 3, 1))                       # (N,H,W,Cin)
    w_mat = jnp.transpose(w_oihw, (2, 3, 1, 0)).reshape(kdim, cout)    # (K, Cout)
    w_mat = jnp.pad(w_mat, ((0, 0), (0, cpad - cout))).astype(x_nhwc.dtype)

    itemsize = x_nhwc.dtype.itemsize
    vmem_limit = 32 * 1024 * 1024     # explicit scoped-VMEM cap; safe on v7x

    # ---- pass 1: conv + partial stats -------------------------------------
    conv_t, stats = pl.pallas_call(
        functools.partial(_conv_stats_kernel, stride=stride, pad=pad,
                          ksize=(kh, kw)),
        grid=(n,),
        in_specs=[
            pl.BlockSpec((None, h, w, cin), lambda i: (i, 0, 0, 0)),
            pl.BlockSpec((kdim, cpad), lambda i: (0, 0)),
        ],
        out_specs=(
            pl.BlockSpec((None, cout, m), lambda i: (i, 0, 0)),
            pl.BlockSpec((None, cout, 2), lambda i: (i, 0, 0)),
        ),
        out_shape=(
            jax.ShapeDtypeStruct((n, cout, m), jnp.float32),
            jax.ShapeDtypeStruct((n, cout, 2), jnp.float32),
        ),
        scratch_shapes=[pltpu.VMEM((hp, wp, cin), x_nhwc.dtype)],
        compiler_params=pltpu.CompilerParams(
            dimension_semantics=("parallel",),
            vmem_limit_bytes=vmem_limit),
        cost_estimate=pl.CostEstimate(
            flops=2 * n * m * kdim * cpad + 4 * n * m * cout,
            transcendentals=0,
            bytes_accessed=(n * h * w * cin * itemsize
                            + kdim * cpad * itemsize
                            + n * cout * m * 4 + n * cout * 2 * 4)),
    )(x_nhwc, w_mat)

    # ---- BN finalization (hoisted out of the per-tile path) ---------------
    # Tiny O(N*Cout) math on the partial stats -> per-channel scale / shift.
    count = float(n * m)
    tot = jnp.sum(stats, axis=0)                                 # (Cout, 2)
    mean = tot[:, 0] / count
    var = jnp.maximum(tot[:, 1] / count - mean * mean, 0.0)      # biased var
    inv_std = jax.lax.rsqrt(var + eps)
    scale = gamma.astype(jnp.float32) * inv_std                  # (Cout,)
    shift = beta.astype(jnp.float32) - mean * scale              # (Cout,)

    rows = n * cout
    scale_rows = jnp.tile(scale, n).reshape(rows, 1)             # row r -> ch r % Cout
    shift_rows = jnp.tile(shift, n).reshape(rows, 1)
    conv_flat = conv_t.reshape(rows, m)                          # contiguous: free

    # ---- pass 2: scale/shift + ReLU over big lane-dense flat tiles --------
    out_dt = x_nchw.dtype
    tr = _pick_tile_rows(rows, m * (4 + out_dt.itemsize), 8 * 1024 * 1024)
    out_flat = pl.pallas_call(
        _bn_act_kernel,
        grid=(rows // tr,),
        in_specs=[
            pl.BlockSpec((tr, m), lambda i: (i, 0)),
            pl.BlockSpec((tr, 1), lambda i: (i, 0)),
            pl.BlockSpec((tr, 1), lambda i: (i, 0)),
        ],
        out_specs=pl.BlockSpec((tr, m), lambda i: (i, 0)),
        out_shape=jax.ShapeDtypeStruct((rows, m), out_dt),
        compiler_params=pltpu.CompilerParams(
            dimension_semantics=("parallel",),
            vmem_limit_bytes=vmem_limit),
        cost_estimate=pl.CostEstimate(
            flops=3 * rows * m,
            transcendentals=0,
            bytes_accessed=rows * m * (4 + out_dt.itemsize) + 2 * rows * 4),
    )(conv_flat, scale_rows, shift_rows)

    # (N*Cout, Hout*Wout) is NCHW-contiguous: pure (free) reshape, no
    # transpose and no channel-padding slice.
    return out_flat.reshape(n, cout, hout, wout)


# ----------------------------------------------------------------------------
# Pure-JAX reference (lax conv + training-mode BN + ReLU).
# ----------------------------------------------------------------------------
def _reference(x_nchw, w_oihw, gamma, beta, *, stride, eps):
    pad = w_oihw.shape[2] // 2
    y = jax.lax.conv_general_dilated(
        x_nchw.astype(jnp.float32), w_oihw.astype(jnp.float32),
        window_strides=(stride, stride),
        padding=[(pad, pad), (pad, pad)],
        dimension_numbers=("NCHW", "OIHW", "NCHW"))
    mean = jnp.mean(y, axis=(0, 2, 3), keepdims=True)
    var = jnp.mean((y - mean) ** 2, axis=(0, 2, 3), keepdims=True)
    y = (y - mean) * jax.lax.rsqrt(var + eps)
    y = y * gamma.reshape(1, -1, 1, 1) + beta.reshape(1, -1, 1, 1)
    return jnp.maximum(y, 0.0)


if __name__ == "__main__":
    # Module config: ConvBnAct(in_chs=4, out_chs=8, kernel_size=3, stride=1)
    N, CIN, H, W = 2, 4, 16, 16
    COUT, K, STRIDE = 8, 3, 1
    EPS = 1e-5

    key = jax.random.PRNGKey(0)
    kx, kw_key, kg, kb = jax.random.split(key, 4)

    x = jax.random.normal(kx, (N, CIN, H, W), dtype=jnp.float32)
    # Conv2d weight shape in PyTorch: (out_chs, in_chs, K, K), bias=False
    w = 0.1 * jax.random.normal(kw_key, (COUT, CIN, K, K), dtype=jnp.float32)
    # BatchNorm2d affine params (deterministic, non-trivial)
    gamma = 1.0 + 0.1 * jax.random.normal(kg, (COUT,), dtype=jnp.float32)
    beta = 0.1 * jax.random.normal(kb, (COUT,), dtype=jnp.float32)

    out = conv_bn_act(x, w, gamma, beta, stride=STRIDE, eps=EPS)
    out = jax.block_until_ready(out)

    ref = _reference(x, w, gamma, beta, stride=STRIDE, eps=EPS)
    assert out.shape == (N, COUT, H, W), out.shape
    assert jnp.allclose(out, ref, atol=1e-4, rtol=1e-4), (
        float(jnp.max(jnp.abs(out - ref))))

    print("KERNEL_OK")
</pallas_src>

<mosaic_0001>
module attributes {stable_mosaic.version = 11 : i64} {
  func.func @_conv_stats_kernel(%arg0: i32, %arg1: memref<1x16x16x4xf32, #tpu.memory_space<vmem>>, %arg2: memref<36x128xf32, #tpu.memory_space<vmem>>, %arg3: memref<1x8x256xf32, #tpu.memory_space<vmem>>, %arg4: memref<1x8x2xf32, #tpu.memory_space<vmem>>, %arg5: memref<18x18x4xf32, #tpu.memory_space<vmem>>) attributes {dimension_semantics = [#tpu.dimension_semantics<parallel>], iteration_bounds = array<i64: 2>, scalar_prefetch = 0 : i64, scratch_operands = 1 : i64, tpu.core_type = #tpu.core_type<tc>, window_params = [{transform_indices = @transform_0, window_bounds = array<i64: 1, 16, 16, 4>}, {pipeline_mode = #tpu.pipeline_mode<synchronous>, transform_indices = @transform_1, window_bounds = array<i64: 36, 128>}, {transform_indices = @transform_2, window_bounds = array<i64: 1, 8, 256>}, {transform_indices = @transform_3, window_bounds = array<i64: 1, 8, 2>}]} {
    %cst = arith.constant 0.000000e+00 : f32
    %0 = vector.broadcast %cst : f32 to vector<1x18x4xf32>
    %c0 = arith.constant 0 : index
    %c0_0 = arith.constant 0 : index
    %c0_1 = arith.constant 0 : index
    %1 = vector.load %arg5[%c0, %c0_0, %c0_1] : memref<18x18x4xf32, #tpu.memory_space<vmem>>, vector<1x18x4xf32>
    tpu.vector_store %arg5[%c0, %c0_0, %c0_1], %0 {strides = array<i32>} : memref<18x18x4xf32, #tpu.memory_space<vmem>>, vector<1x18x4xf32>,
    %cst_2 = arith.constant 0.000000e+00 : f32
    %2 = vector.broadcast %cst_2 : f32 to vector<1x18x4xf32>
    %c17 = arith.constant 17 : index
    %c0_3 = arith.constant 0 : index
    %c0_4 = arith.constant 0 : index
    %3 = vector.load %arg5[%c17, %c0_3, %c0_4] : memref<18x18x4xf32, #tpu.memory_space<vmem>>, vector<1x18x4xf32>
    tpu.vector_store %arg5[%c17, %c0_3, %c0_4], %2 {strides = array<i32>} : memref<18x18x4xf32, #tpu.memory_space<vmem>>, vector<1x18x4xf32>,
    %cst_5 = arith.constant 0.000000e+00 : f32
    %4 = vector.broadcast %cst_5 : f32 to vector<16x1x4xf32>
    %c1 = arith.constant 1 : index
    %c0_6 = arith.constant 0 : index
    %c0_7 = arith.constant 0 : index
    %5 = vector.load %arg5[%c1, %c0_6, %c0_7] : memref<18x18x4xf32, #tpu.memory_space<vmem>>, vector<16x1x4xf32>
    tpu.vector_store %arg5[%c1, %c0_6, %c0_7], %4 {strides = array<i32>} : memref<18x18x4xf32, #tpu.memory_space<vmem>>, vector<16x1x4xf32>,
    %cst_8 = arith.constant 0.000000e+00 : f32
    %6 = vector.broadcast %cst_8 : f32 to vector<16x1x4xf32>
    %c1_9 = arith.constant 1 : index
    %c17_10 = arith.constant 17 : index
    %c0_11 = arith.constant 0 : index
    %7 = vector.load %arg5[%c1_9, %c17_10, %c0_11] : memref<18x18x4xf32, #tpu.memory_space<vmem>>, vector<16x1x4xf32>
    tpu.vector_store %arg5[%c1_9, %c17_10, %c0_11], %6 {strides = array<i32>} : memref<18x18x4xf32, #tpu.memory_space<vmem>>, vector<16x1x4xf32>,
    %c0_12 = arith.constant 0 : index
    %c0_13 = arith.constant 0 : index
    %c0_14 = arith.constant 0 : index
    %c0_15 = arith.constant 0 : index
    %8 = vector.load %arg1[%c0_12, %c0_13, %c0_14, %c0_15] : memref<1x16x16x4xf32, #tpu.memory_space<vmem>>, vector<1x16x16x4xf32>
    %9 = vector.shape_cast %8 : vector<1x16x16x4xf32> to vector<16x16x4xf32>
    %c1_16 = arith.constant 1 : index
    %c1_17 = arith.constant 1 : index
    %c0_18 = arith.constant 0 : index
    %10 = vector.load %arg5[%c1_16, %c1_17, %c0_18] : memref<18x18x4xf32, #tpu.memory_space<vmem>>, vector<16x16x4xf32>
    tpu.vector_store %arg5[%c1_16, %c1_17, %c0_18], %9 {strides = array<i32>} : memref<18x18x4xf32, #tpu.memory_space<vmem>>, vector<16x16x4xf32>,
    %c0_19 = arith.constant 0 : index
    %c0_20 = arith.constant 0 : index
    %c0_21 = arith.constant 0 : index
    %11 = vector.load %arg5[%c0_19, %c0_20, %c0_21] : memref<18x18x4xf32, #tpu.memory_space<vmem>>, vector<18x18x4xf32>
    %12 = vector.extract_strided_slice %11 {offsets = [0, 0, 0], sizes = [16, 16, 4], strides = [1, 1, 1]} : vector<18x18x4xf32> to vector<16x16x4xf32>
    %13 = vector.extract_strided_slice %11 {offsets = [0, 1, 0], sizes = [16, 16, 4], strides = [1, 1, 1]} : vector<18x18x4xf32> to vector<16x16x4xf32>
    %14 = vector.extract_strided_slice %11 {offsets = [0, 2, 0], sizes = [16, 16, 4], strides = [1, 1, 1]} : vector<18x18x4xf32> to vector<16x16x4xf32>
    %15 = vector.extract_strided_slice %11 {offsets = [1, 0, 0], sizes = [16, 16, 4], strides = [1, 1, 1]} : vector<18x18x4xf32> to vector<16x16x4xf32>
    %16 = vector.extract_strided_slice %11 {offsets = [1, 1, 0], sizes = [16, 16, 4], strides = [1, 1, 1]} : vector<18x18x4xf32> to vector<16x16x4xf32>
    %17 = vector.extract_strided_slice %11 {offsets = [1, 2, 0], sizes = [16, 16, 4], strides = [1, 1, 1]} : vector<18x18x4xf32> to vector<16x16x4xf32>
    %18 = vector.extract_strided_slice %11 {offsets = [2, 0, 0], sizes = [16, 16, 4], strides = [1, 1, 1]} : vector<18x18x4xf32> to vector<16x16x4xf32>
    %19 = vector.extract_strided_slice %11 {offsets = [2, 1, 0], sizes = [16, 16, 4], strides = [1, 1, 1]} : vector<18x18x4xf32> to vector<16x16x4xf32>
    %20 = vector.extract_strided_slice %11 {offsets = [2, 2, 0], sizes = [16, 16, 4], strides = [1, 1, 1]} : vector<18x18x4xf32> to vector<16x16x4xf32>
    %21 = tpu.concatenate %12, %13, %14, %15, %16, %17, %18, %19, %20 in 2 : vector<16x16x4xf32>, vector<16x16x4xf32>, vector<16x16x4xf32>, vector<16x16x4xf32>, vector<16x16x4xf32>, vector<16x16x4xf32>, vector<16x16x4xf32>, vector<16x16x4xf32>, vector<16x16x4xf32> -> vector<16x16x36xf32>
    %22 = vector.shape_cast %21 : vector<16x16x36xf32> to vector<256x36xf32>
    %c0_22 = arith.constant 0 : index
    %c0_23 = arith.constant 0 : index
    %23 = vector.load %arg2[%c0_22, %c0_23] : memref<36x128xf32, #tpu.memory_space<vmem>>, vector<36x128xf32>
    %cst_24 = arith.constant dense<0.000000e+00> : vector<256x128xf32>
    %24 = tpu.matmul %22, %23, %cst_24 {dimension_numbers = #tpu.dot_dimension_numbers<[1], [0], [0], [1], [0, 0, 1, 1], [], []>} : vector<256x36xf32>, vector<36x128xf32>, vector<256x128xf32> -> vector<256x128xf32>
    %25 = tpu.transpose %24, [1, 0] : vector<256x128xf32> -> vector<128x256xf32>
    %26 = vector.extract_strided_slice %25 {offsets = [0, 0], sizes = [8, 256], strides = [1, 1]} : vector<128x256xf32> to vector<8x256xf32>
    %c0_25 = arith.constant 0 : index
    %c0_26 = arith.constant 0 : index
    %c0_27 = arith.constant 0 : index
    %27 = vector.load %arg3[%c0_25, %c0_26, %c0_27] : memref<1x8x256xf32, #tpu.memory_space<vmem>>, vector<1x8x256xf32>
    %28 = vector.shape_cast %27 : vector<1x8x256xf32> to vector<8x256xf32>
    %29 = vector.shape_cast %26 : vector<8x256xf32> to vector<1x8x256xf32>
    tpu.vector_store %arg3[%c0_25, %c0_26, %c0_27], %29 {strides = array<i32>} : memref<1x8x256xf32, #tpu.memory_space<vmem>>, vector<1x8x256xf32>,
    %cst_28 = arith.constant dense<0.000000e+00> : vector<8xf32>
    %30 = vector.multi_reduction <add>, %26, %cst_28 [1] : vector<8x256xf32> to vector<8xf32>
    %31 = vector.shape_cast %30 : vector<8xf32> to vector<8x1xf32>
    %32 = arith.mulf %26, %26 : vector<8x256xf32>
    %cst_29 = arith.constant dense<0.000000e+00> : vector<8xf32>
    %33 = vector.multi_reduction <add>, %32, %cst_29 [1] : vector<8x256xf32> to vector<8xf32>
    %34 = vector.shape_cast %33 : vector<8xf32> to vector<8x1xf32>
    %35 = tpu.concatenate %31, %34 in 1 : vector<8x1xf32>, vector<8x1xf32> -> vector<8x2xf32>
    %c0_30 = arith.constant 0 : index
    %c0_31 = arith.constant 0 : index
    %c0_32 = arith.constant 0 : index
    %36 = vector.load %arg4[%c0_30, %c0_31, %c0_32] : memref<1x8x2xf32, #tpu.memory_space<vmem>>, vector<1x8x2xf32>
    %37 = vector.shape_cast %36 : vector<1x8x2xf32> to vector<8x2xf32>
    %38 = vector.shape_cast %35 : vector<8x2xf32> to vector<1x8x2xf32>
    tpu.vector_store %arg4[%c0_30, %c0_31, %c0_32], %38 {strides = array<i32>} : memref<1x8x2xf32, #tpu.memory_space<vmem>>, vector<1x8x2xf32>,
    return
  }
  func.func @transform_0(%arg0: i32) -> (i32, i32, i32, i32) {
    %c0_i32 = arith.constant 0 : i32
    %c0_i32_0 = arith.constant 0 : i32
    %c0_i32_1 = arith.constant 0 : i32
    %c0_i32_2 = arith.constant 0 : i32
    return %arg0, %c0_i32, %c0_i32_0, %c0_i32_1 : i32, i32, i32, i32
  }
  func.func @transform_1(%arg0: i32) -> (i32, i32) {
    %c0_i32 = arith.constant 0 : i32
    %c0_i32_0 = arith.constant 0 : i32
    %c0_i32_1 = arith.constant 0 : i32
    return %c0_i32, %c0_i32_0 : i32, i32
  }
  func.func @transform_2(%arg0: i32) -> (i32, i32, i32) {
    %c0_i32 = arith.constant 0 : i32
    %c0_i32_0 = arith.constant 0 : i32
    %c0_i32_1 = arith.constant 0 : i32
    return %arg0, %c0_i32, %c0_i32_0 : i32, i32, i32
  }
  func.func @transform_3(%arg0: i32) -> (i32, i32, i32) {
    %c0_i32 = arith.constant 0 : i32
    %c0_i32_0 = arith.constant 0 : i32
    %c0_i32_1 = arith.constant 0 : i32
    return %arg0, %c0_i32, %c0_i32_0 : i32, i32, i32
  }
}

</mosaic_0001>

<bundles_post_ra>
// kernel: tpu_custom_call.1
= control target key start
LH: loop header
LB: loop body
LE: loop exit
PB: predicated region body
PF: predicated region fallthrough
CT: control target
= control target key end

     0   :  { %9 = vsyncpa [#allocation4], 0  ;;  %s4305_s0 = inlined_call_operand.vmem [shape: f32[2,16,16,4], index: 0, kind: input, shape index: {}]   ;;  %s4306_s1 = inlined_call_operand.vmem [shape: f32[36,128], index: 1, kind: input, shape index: {}]   ;;  %s4307_s2 = inlined_call_operand.hbm [shape: f32[2,8,256], index: 2, kind: output, shape index: {0}]   ;;  %s4308_s3 = inlined_call_operand.vmem [shape: f32[2,8,2], index: 3, kind: output, shape index: {1}]  }
   0x1   :  { %11 = vsyncpa [#allocation4 + $0x1], 0  ;;  %s2453_s12 = smov 0   ;;  %s2455_s13 = smov 0  }
   0x2   :  { %s2457_s14 = smov 0   ;;  %s2459_s15 = smov 0  }
   0x3 LB: > { %s2474_s16 = sadd.s32 4294967295, %s2421_s15   ;;  %s2122_s17 = sadd.s32 4294967294, %s2421_s15   ;;  %s2421_s15 = sphi %s2459_s15, %s4608_s15   ;;  %s2417_s14 = sphi %s2457_s14, %s4607_s14   ;;  %s2413_s13 = sphi %s2455_s13, %s4606_s13   ;;  %s2409_s12 = sphi %s2453_s12, %s4605_s12  }
   0x4   : > { %s2478_s18 = sadd.s32 1, %s2421_s15   ;;  %s71_s19 = sadd.s32 1, %s2417_s14 }
   0x5   : > { %s68_s20 = ssub.s32 %s2421_s15, %s2478_s18  ;;  %p81_p0 = scmp.ne.s32.totalorder %s2417_s14, %s2413_s13 }
   0x6   : > { %p69_p1 = scmp.eq.s32.totalorder %s68_s20, 0  ;;  %p82_p2 = scmp.eq.s32.totalorder %s2474_s16, 1 }
   0x7   : > { %p87_p3 = scmp.ne.s32.totalorder %s2413_s13, %s2409_s12  ;;  %p88_p4 = scmp.eq.s32.totalorder %s2122_s17, 1 }
   0x8   : > { %s2489_s21 = scalar_select %p69_p1, %s2417_s14, %s71_s19  }
   0x9   : > { %p2491_p5 = por %p82_p2, %p81_p0  ;;  %p2495_p6 = por %p88_p4, %p87_p3 }
   0xa   : > { %p2125_p7 = scmp.ge.s32.totalorder %s2421_s15, 1  ;;  %p143_p8 = scmp.lt.s32.totalorder %s2421_s15, 3 }
   0xc   : > { %p144_p9 = pnand %p2125_p7, %p143_p8 }
   0xe   : > { %147 = sbr.rel (%p144_p9) target bundleno = 1110 (0x456), region = 28 }
  0x15   : > { %vm180_vm0 = vcmask 31744   ;;  %vm183_vm1 = vcmask 25600   ;;  %p171_p10 = scmp.lt.s32.totalorder %s2474_s16, 1  ;;  %v2423_v0 = vmov 0.0   ;;  %vm190_vm2 = vcmask 24576   ;;  %s2424_s29 = smov 4  }
  0x16   : > { %181 = vst.msk [vmem:[#allocation2] sm:$0xff] %vm180_vm0, %v2423_v0  ;;  %182 = vst.msk [vmem:[#allocation2 + $0x8] sm:$0xff] %vm180_vm0, %v2423_v0  ;;  %vm389_vm3 = vcmask 1046528   ;;  %vm566_vm4 = vcmask 1045504   ;;  %s2425_s30 = smov 8   ;;  %s2426_s4 = smov 12  }
  0x17   : > { %186 = vst.msk [vmem:[#allocation2 + $0x198] sm:$0xff] %vm180_vm0, %v2423_v0  ;;  %187 = vst.msk [vmem:[#allocation2 + $0x1a0] sm:$0xff] %vm180_vm0, %v2423_v0  ;;  %s2507_s24 = scalar_select %p171_p10, %s2474_s16, 1  ;;  %vm1710_vm5 = vcmask 1043456   ;;  %vm1377_vm6 = vcmask 64512   ;;  %vm1410_vm7 = vcmask 97280  }
  0x18   : > { %184 = vst.msk [vmem:[#allocation2 + $0x10] sm:$0x3] %vm183_vm1, %v2423_v0  ;;  %188 = vst.msk [vmem:[#allocation2 + $0x1a8] sm:$0x3] %vm183_vm1, %v2423_v0  ;;  %s2427_s5 = smov 16   ;;  %s2428_s6 = smov 20  }
  0x19   : > { %191 = vst.msk [vmem:[#allocation2 + $0x18] sm:$0x1] %vm190_vm2, %v2423_v0  ;;  %192 = vst.msk [vmem:[#allocation2 + $0x30] sm:$0x1] %vm190_vm2, %v2423_v0  ;;  %s2168_s25 = sshll.u32 %s2507_s24, 8  ;;  %s2429_s7 = smov 24  }
  0x1a   : > { %193 = vst.msk [vmem:[#allocation2 + $0x48] sm:$0x1] %vm190_vm2, %v2423_v0  ;;  %194 = vst.msk [vmem:[#allocation2 + $0x60] sm:$0x1] %vm190_vm2, %v2423_v0  ;;  %s2545_s28 = scalar_lea.vmem %s4305_s0, %s2168_s25  ;;  %s2430_s17 = smov 28   ;;  %vm1443_vm8 = vcmask 130048  }
  0x1b   : > { %195 = vst.msk [vmem:[#allocation2 + $0x78] sm:$0x1] %vm190_vm2, %v2423_v0  ;;  %196 = vst.msk [vmem:[#allocation2 + $0x90] sm:$0x1] %vm190_vm2, %v2423_v0  ;;  %v223_v1 = vld [vmem:[%s2545_s28] sm:$0xff]  ;;  %v224_v2 = vld [vmem:[%s2545_s28 + $0x8] sm:$0xff] }
  0x1c   : > { %197 = vst.msk [vmem:[#allocation2 + $0xa8] sm:$0x1] %vm190_vm2, %v2423_v0  ;;  %198 = vst.msk [vmem:[#allocation2 + $0xc0] sm:$0x1] %vm190_vm2, %v2423_v0  ;;  %v225_v3 = vld [vmem:[%s2545_s28 + $0x10] sm:$0xff]  ;;  %v226_v4 = vld [vmem:[%s2545_s28 + $0x18] sm:$0xff] }
  0x1d   : > { %199 = vst.msk [vmem:[#allocation2 + $0xd8] sm:$0x1] %vm190_vm2, %v2423_v0  ;;  %200 = vst.msk [vmem:[#allocation2 + $0xf0] sm:$0x1] %vm190_vm2, %v2423_v0  ;;  %v227_v5 = vld [vmem:[%s2545_s28 + $0x20] sm:$0xff]  ;;  %v228_v6 = vld [vmem:[%s2545_s28 + $0x28] sm:$0xff] }
  0x1e   : > { %201 = vst.msk [vmem:[#allocation2 + $0x108] sm:$0x1] %vm190_vm2, %v2423_v0  ;;  %202 = vst.msk [vmem:[#allocation2 + $0x120] sm:$0x1] %vm190_vm2, %v2423_v0  ;;  %v2556_v7 = vld [vmem:[#allocation2] sm:$0xff]  ;;  %v2558_v8 = vld [vmem:[#allocation2 + $0x8] sm:$0xff] }
  0x1f   : > { %203 = vst.msk [vmem:[#allocation2 + $0x138] sm:$0x1] %vm190_vm2, %v2423_v0  ;;  %204 = vst.msk [vmem:[#allocation2 + $0x150] sm:$0x1] %vm190_vm2, %v2423_v0  ;;  %v2560_v9 = vld [vmem:[#allocation2 + $0x10] sm:$0x3] }
  0x20   : > { %205 = vst.msk [vmem:[#allocation2 + $0x168] sm:$0x1] %vm190_vm2, %v2423_v0  ;;  %206 = vst.msk [vmem:[#allocation2 + $0x180] sm:$0x1] %vm190_vm2, %v2423_v0  ;;  %v390_v10 = vrot.slane %v2556_v7, 1  ;;  %v391_v11 = vrot.slane %v2558_v8, 1 }
  0x21   : > { %207 = vst.msk [vmem:[#allocation2 + $0x29] sm:$0x1] %vm190_vm2, %v2423_v0  ;;  %208 = vst.msk [vmem:[#allocation2 + $0x41] sm:$0x1] %vm190_vm2, %v2423_v0  ;;  %v393_v12 = vrot.slane %v2560_v9, 1  ;;  %v229_v13 = vld [vmem:[%s2545_s28 + $0x30] sm:$0xff] }
  0x22   : > { %209 = vst.msk [vmem:[#allocation2 + $0x59] sm:$0x1] %vm190_vm2, %v2423_v0  ;;  %210 = vst.msk [vmem:[#allocation2 + $0x71] sm:$0x1] %vm190_vm2, %v2423_v0  ;;  %v230_v14 = vld [vmem:[%s2545_s28 + $0x38] sm:$0xff]  ;;  %v231_v15 = vld [vmem:[%s2545_s28 + $0x40] sm:$0xff]  ;;  %v392_v19 = vsel %vm389_vm3, %v390_v10, %v391_v11 }
  0x23   : > { %211 = vst.msk [vmem:[#allocation2 + $0x89] sm:$0x1] %vm190_vm2, %v2423_v0  ;;  %212 = vst.msk [vmem:[#allocation2 + $0xa1] sm:$0x1] %vm190_vm2, %v2423_v0  ;;  %v232_v16 = vld [vmem:[%s2545_s28 + $0x48] sm:$0xff]  ;;  %v233_v17 = vld [vmem:[%s2545_s28 + $0x50] sm:$0xff]  ;;  %470 = vrot.lane.b32.xlu0 %v392_v19, %s2424_s29  ;;  %v394_v26 = vsel %vm389_vm3, %v391_v11, %v393_v12 }
  0x24   : > { %213 = vst.msk [vmem:[#allocation2 + $0xb9] sm:$0x1] %vm190_vm2, %v2423_v0  ;;  %214 = vst.msk [vmem:[#allocation2 + $0xd1] sm:$0x1] %vm190_vm2, %v2423_v0  ;;  %v234_v18 = vld [vmem:[%s2545_s28 + $0x58] sm:$0xff]  ;;  %v235_v20 = vld [vmem:[%s2545_s28 + $0x60] sm:$0xff] }
  0x25   : > { %215 = vst.msk [vmem:[#allocation2 + $0xe9] sm:$0x1] %vm190_vm2, %v2423_v0  ;;  %216 = vst.msk [vmem:[#allocation2 + $0x101] sm:$0x1] %vm190_vm2, %v2423_v0  ;;  %v236_v21 = vld [vmem:[%s2545_s28 + $0x68] sm:$0xff]  ;;  %v237_v22 = vld [vmem:[%s2545_s28 + $0x70] sm:$0xff] }
  0x26   : > { %217 = vst.msk [vmem:[#allocation2 + $0x119] sm:$0x1] %vm190_vm2, %v2423_v0  ;;  %218 = vst.msk [vmem:[#allocation2 + $0x131] sm:$0x1] %vm190_vm2, %v2423_v0  ;;  %v238_v23 = vld [vmem:[%s2545_s28 + $0x78] sm:$0xff]  ;;  %v239_v24 = vld [vmem:[%s2545_s28 + $0x80] sm:$0xff] }
  0x27   : > { %219 = vst.msk [vmem:[#allocation2 + $0x149] sm:$0x1] %vm190_vm2, %v2423_v0  ;;  %220 = vst.msk [vmem:[#allocation2 + $0x161] sm:$0x1] %vm190_vm2, %v2423_v0  ;;  %v240_v25 = vld [vmem:[%s2545_s28 + $0x88] sm:$0xff]  ;;  %v241_v27 = vld [vmem:[%s2545_s28 + $0x90] sm:$0xff]  ;;  %472 = vrot.lane.b32.xlu0 %v394_v26, %s2424_s29 }
  0x28   : > { %221 = vst.msk [vmem:[#allocation2 + $0x179] sm:$0x1] %vm190_vm2, %v2423_v0  ;;  %222 = vst.msk [vmem:[#allocation2 + $0x191] sm:$0x1] %vm190_vm2, %v2423_v0  ;;  %v242_v28 = vld [vmem:[%s2545_s28 + $0x98] sm:$0xff]  ;;  %v243_v29 = vld [vmem:[%s2545_s28 + $0xa0] sm:$0xff] }
  0x29   : > { %255 = vst.msk [vmem:[#allocation2 + $0x19] sm:$0xff] %vm180_vm0, %v223_v1  ;;  %256 = vst.msk [vmem:[#allocation2 + $0x21] sm:$0xff] %vm180_vm0, %v224_v2  ;;  %v244_v60 = vld [vmem:[%s2545_s28 + $0xa8] sm:$0xff]  ;;  %v245_v2 = vld [vmem:[%s2545_s28 + $0xb0] sm:$0xff]  ;;  %vm1476_vm9 = vcmask 162816   ;;  %vm1509_vm10 = vcmask 195584  }
  0x2a   : > { %257 = vst.msk [vmem:[#allocation2 + $0x31] sm:$0xff] %vm180_vm0, %v225_v3  ;;  %258 = vst.msk [vmem:[#allocation2 + $0x39] sm:$0xff] %vm180_vm0, %v226_v4  ;;  %v246_v3 = vld [vmem:[%s2545_s28 + $0xb8] sm:$0xff]  ;;  %v247_v4 = vld [vmem:[%s2545_s28 + $0xc0] sm:$0xff]  ;;  %vm1542_vm11 = vcmask 228352   ;;  %vm1575_vm12 = vcmask 261120  }
  0x2b   : > { %259 = vst.msk [vmem:[#allocation2 + $0x49] sm:$0xff] %vm180_vm0, %v227_v5  ;;  %260 = vst.msk [vmem:[#allocation2 + $0x51] sm:$0xff] %vm180_vm0, %v228_v6  ;;  %v248_v10 = vld [vmem:[%s2545_s28 + $0xc8] sm:$0xff]  ;;  %v249_v11 = vld [vmem:[%s2545_s28 + $0xd0] sm:$0xff]  ;;  %vm1613_vm13 = vcmask 293888   ;;  %s2432_s19 = smov [#allocation3]  }
  0x2c   : > { %261 = vst.msk [vmem:[#allocation2 + $0x61] sm:$0xff] %vm180_vm0, %v229_v13  ;;  %262 = vst.msk [vmem:[#allocation2 + $0x69] sm:$0xff] %vm180_vm0, %v230_v14  ;;  %v250_v12 = vld [vmem:[%s2545_s28 + $0xd8] sm:$0xff]  ;;  %v251_v14 = vld [vmem:[%s2545_s28 + $0xe0] sm:$0xff]  ;;  %s2363_s20 = sshll.u32 %s2432_s19, 4  ;;  %s2364_s20 = int_to_ptr.vmem [resolvable:$false] %s2363_s20 }
  0x2d   : > { %263 = vst.msk [vmem:[#allocation2 + $0x79] sm:$0xff] %vm180_vm0, %v231_v15  ;;  %264 = vst.msk [vmem:[#allocation2 + $0x81] sm:$0xff] %vm180_vm0, %v232_v16  ;;  %v252_v15 = vld [vmem:[%s2545_s28 + $0xe8] sm:$0xff]  ;;  %s2365_s25 = scalar_lea.vmem %s2364_s20, 512 }
  0x2e   : > { %265 = vst.msk [vmem:[#allocation2 + $0x91] sm:$0xff] %vm180_vm0, %v233_v17  ;;  %266 = vst.msk [vmem:[#allocation2 + $0x99] sm:$0xff] %vm180_vm0, %v234_v18 }
  0x2f   : > { %267 = vst.msk [vmem:[#allocation2 + $0xa9] sm:$0xff] %vm180_vm0, %v235_v20  ;;  %268 = vst.msk [vmem:[#allocation2 + $0xb1] sm:$0xff] %vm180_vm0, %v236_v21 }
  0x30   : > { %269 = vst.msk [vmem:[#allocation2 + $0xc1] sm:$0xff] %vm180_vm0, %v237_v22  ;;  %270 = vst.msk [vmem:[#allocation2 + $0xc9] sm:$0xff] %vm180_vm0, %v238_v23  ;;  %v2598_v30 = vld [vmem:[#allocation2 + $0x18] sm:$0xff]  ;;  %v2600_v31 = vld [vmem:[#allocation2 + $0x20] sm:$0xff] }
  0x31   : > { %271 = vst.msk [vmem:[#allocation2 + $0xd9] sm:$0xff] %vm180_vm0, %v239_v24  ;;  %272 = vst.msk [vmem:[#allocation2 + $0xe1] sm:$0xff] %vm180_vm0, %v240_v25  ;;  %v2602_v32 = vld [vmem:[#allocation2 + $0x30] sm:$0xff]  ;;  %v395_v33 = vrot.slane %v2598_v30, 1  ;;  %v396_v34 = vrot.slane %v2600_v31, 1  ;;  %v2609_v35 = vld [vmem:[#allocation2 + $0x38] sm:$0xff] }
  0x32   : > { %273 = vst.msk [vmem:[#allocation2 + $0xf1] sm:$0xff] %vm180_vm0, %v241_v27  ;;  %274 = vst.msk [vmem:[#allocation2 + $0xf9] sm:$0xff] %vm180_vm0, %v242_v28  ;;  %v400_v36 = vrot.slane %v2602_v32, 1  ;;  %v2612_v37 = vld [vmem:[#allocation2 + $0x28] sm:$0x3]  ;;  %v401_v38 = vrot.slane %v2609_v35, 1 }
  0x33   : > { %275 = vst.msk [vmem:[#allocation2 + $0x109] sm:$0xff] %vm180_vm0, %v243_v29  ;;  %v398_v39 = vrot.slane %v2612_v37, 1  ;;  %v2617_v40 = vld [vmem:[#allocation2 + $0x48] sm:$0xff]  ;;  %v2619_v41 = vld [vmem:[#allocation2 + $0x50] sm:$0xff]  ;;  %v2621_v42 = vld [vmem:[#allocation2 + $0x40] sm:$0x3]  ;;  %v2624_v43 = vsel %vm389_vm3, %v395_v33, %v396_v34 }
  0x34   : > { %v405_v44 = vrot.slane %v2617_v40, 1  ;;  %v406_v45 = vrot.slane %v2619_v41, 1  ;;  %474 = vrot.lane.b32.xlu1 %v2624_v43, %s2424_s29  ;;  %v2631_v46 = vsel %vm389_vm3, %v400_v36, %v401_v38  ;;  %v2633_v47 = vld [vmem:[#allocation2 + $0x60] sm:$0xff]  ;;  %v2635_v48 = vld [vmem:[#allocation2 + $0x68] sm:$0xff]  ;;  %v403_v50 = vrot.slane %v2621_v42, 1  ;;  %v2652_v55 = vld [vmem:[#allocation2 + $0x78] sm:$0xff] }
  0x35   : > { %4394 = vst [vmem:[#allocation6_spill] sm:$0xff] %v2631_v46  ;;  %v2638_v49 = vsel %vm389_vm3, %v396_v34, %v398_v39  ;;  %478 = vrot.lane.b32.xlu0 %v2631_v46, %s2424_s29  ;;  %v2643_v51 = vld [vmem:[#allocation2 + $0x58] sm:$0x3]  ;;  %v410_v53 = vrot.slane %v2633_v47, 1  ;;  %v411_v54 = vrot.slane %v2635_v48, 1  ;;  %v2654_v56 = vld [vmem:[#allocation2 + $0x80] sm:$0xff] }
  0x36   : > { %v2646_v52 = vsel %vm389_vm3, %v405_v44, %v406_v45  ;;  %v2657_v57 = vsel %vm389_vm3, %v401_v38, %v403_v50  ;;  %v408_v58 = vrot.slane %v2643_v51, 1  ;;  %v2662_v59 = vld [vmem:[#allocation2 + $0x70] sm:$0x3]  ;;  %v415_v62 = vrot.slane %v2652_v55, 1  ;;  %v2672_v1 = vld [vmem:[#allocation2 + $0x98] sm:$0xff]  ;;  %276 = vst.msk [vmem:[#allocation2 + $0x111] sm:$0xff] %vm180_vm0, %v244_v60 }
  0x37   : > { %4395 = vst [vmem:[#allocation7_spill] sm:$0xff] %v2646_v52  ;;  %4396 = vst [vmem:[#allocation8_spill] sm:$0xff] %v2657_v57  ;;  %v2666_v61 = vsel %vm389_vm3, %v410_v53, %v411_v54  ;;  %v416_v63 = vrot.slane %v2654_v56, 1  ;;  %v2670_v0 = vld [vmem:[#allocation2 + $0x90] sm:$0xff]  ;;  %v413_v6 = vrot.slane %v2662_v59, 1  ;;  %v421_v18 = vrot.slane %v2672_v1, 1 }
  0x38   : > { %476 = vrot.lane.b32.xlu1 %v2638_v49, %s2424_s29  ;;  %4397 = vst [vmem:[#allocation9_spill] sm:$0xff] %v2666_v61  ;;  %v2681_v5 = vsel %vm389_vm3, %v406_v45, %v408_v58  ;;  %277 = vst.msk [vmem:[#allocation2 + $0x121] sm:$0xff] %vm180_vm0, %v245_v2  ;;  %v2692_v13 = vld [vmem:[#allocation2 + $0x88] sm:$0x3]  ;;  %v420_v17 = vrot.slane %v2670_v0, 1  ;;  %v2710_v20 = vld [vmem:[#allocation2 + $0xb0] sm:$0xff] }
  0x39   : > { %482 = vrot.lane.b32.xlu0 %v2646_v52, %s2424_s29  ;;  %4398 = vst [vmem:[#allocation10_spill] sm:$0xff] %v2681_v5  ;;  %278 = vst.msk [vmem:[#allocation2 + $0x129] sm:$0xff] %vm180_vm0, %v246_v3  ;;  %v2700_v16 = vsel %vm389_vm3, %v415_v62, %v416_v63  ;;  %v2708_v19 = vld [vmem:[#allocation2 + $0xa8] sm:$0xff]  ;;  %v2713_v21 = vsel %vm389_vm3, %v411_v54, %v413_v6  ;;  %v418_v22 = vrot.slane %v2692_v13, 1  ;;  %v2718_v23 = vld [vmem:[#allocation2 + $0xa0] sm:$0x3] }
  0x3a   : > { %279 = vst.msk [vmem:[#allocation2 + $0x139] sm:$0xff] %vm180_vm0, %v247_v4  ;;  %280 = vst.msk [vmem:[#allocation2 + $0x141] sm:$0xff] %vm180_vm0, %v248_v10  ;;  %v2721_v24 = vsel %vm389_vm3, %v420_v17, %v421_v18  ;;  %v425_v25 = vrot.slane %v2708_v19, 1  ;;  %v426_v26 = vrot.slane %v2710_v20, 1  ;;  %v2727_v27 = vld [vmem:[#allocation2 + $0xc0] sm:$0xff]  ;;  %v2729_v28 = vld [vmem:[#allocation2 + $0xc8] sm:$0xff] }
  0x3b   : > { %281 = vst.msk [vmem:[#allocation2 + $0x151] sm:$0xff] %vm180_vm0, %v249_v11  ;;  %282 = vst.msk [vmem:[#allocation2 + $0x159] sm:$0xff] %vm180_vm0, %v250_v12  ;;  %v2732_v29 = vsel %vm389_vm3, %v416_v63, %v418_v22  ;;  %v423_v33 = vrot.slane %v2718_v23, 1  ;;  %v2737_v34 = vld [vmem:[#allocation2 + $0xb8] sm:$0x3]  ;;  %v430_v38 = vrot.slane %v2727_v27, 1 }
  0x3c   : > { %480 = vrot.lane.b32.xlu1 %v2657_v57, %s2424_s29  ;;  %4399 = vst [vmem:[#allocation11_spill] sm:$0xff] %v2700_v16  ;;  %283 = vst.msk [vmem:[#allocation2 + $0x169] sm:$0xff] %vm180_vm0, %v251_v14  ;;  %v2740_v36 = vsel %vm389_vm3, %v425_v25, %v426_v26  ;;  %v431_v39 = vrot.slane %v2729_v28, 1  ;;  %v2746_v44 = vld [vmem:[#allocation2 + $0xd8] sm:$0xff]  ;;  %v2748_v45 = vld [vmem:[#allocation2 + $0xe0] sm:$0xff]  ;;  %v428_v53 = vrot.slane %v2737_v34, 1 }
  0x3d   : > { %486 = vrot.lane.b32.xlu0 %v2666_v61, %s2424_s29  ;;  %284 = vst.msk [vmem:[#allocation2 + $0x171] sm:$0xff] %vm180_vm0, %v252_v15  ;;  %4400 = vst [vmem:[#allocation12_spill] sm:$0xff] %v2713_v21  ;;  %v2751_v50 = vsel %vm389_vm3, %v421_v18, %v423_v33  ;;  %v2756_v54 = vld [vmem:[#allocation2 + $0xd0] sm:$0x3]  ;;  %v435_v60 = vrot.slane %v2746_v44, 1  ;;  %v436_v62 = vrot.slane %v2748_v45, 1 }
  0x3e   : > { %4401 = vst [vmem:[#allocation13_spill] sm:$0xff] %v2721_v24  ;;  %4402 = vst [vmem:[#allocation14_spill] sm:$0xff] %v2732_v29  ;;  %v2759_v58 = vsel %vm389_vm3, %v430_v38, %v431_v39  ;;  %v2765_v63 = vld [vmem:[#allocation2 + $0xf0] sm:$0xff]  ;;  %v2767_v2 = vld [vmem:[#allocation2 + $0xf8] sm:$0xff]  ;;  %v2770_v3 = vsel %vm389_vm3, %v426_v26, %v428_v53  ;;  %v433_v4 = vrot.slane %v2756_v54, 1  ;;  %v568_v46 = vrot.slane %v2558_v8, 2 }
  0x3f   : > { %4403 = vst [vmem:[#allocation15_spill] sm:$0xff] %v2740_v36  ;;  %4404 = vst [vmem:[#allocation16_spill] sm:$0xff] %v2751_v50  ;;  %v2775_v6 = vld [vmem:[#allocation2 + $0xe8] sm:$0x3]  ;;  %v2778_v10 = vsel %vm389_vm3, %v435_v60, %v436_v62  ;;  %v440_v11 = vrot.slane %v2765_v63, 1  ;;  %v441_v12 = vrot.slane %v2767_v2, 1 }
  0x40   : > { %484 = vrot.lane.b32.xlu1 %v2681_v5, %s2424_s29  ;;  %4405 = vst [vmem:[#allocation17_spill] sm:$0xff] %v2759_v58  ;;  %4406 = vst [vmem:[#allocation18_spill] sm:$0xff] %v2770_v3  ;;  %v2784_v14 = vld [vmem:[#allocation2 + $0x108] sm:$0xff]  ;;  %v2786_v15 = vld [vmem:[#allocation2 + $0x110] sm:$0xff]  ;;  %v2789_v17 = vsel %vm389_vm3, %v431_v39, %v433_v4  ;;  %v438_v18 = vrot.slane %v2775_v6, 1  ;;  %v573_v8 = vrot.slane %v2600_v31, 2 }
  0x41   : > { %490 = vrot.lane.b32.xlu0 %v2700_v16, %s2424_s29  ;;  %4407 = vst [vmem:[#allocation19_spill] sm:$0xff] %v2778_v10  ;;  %4408 = vst [vmem:[#allocation20_spill] sm:$0xff] %v2789_v17  ;;  %v2794_v22 = vld [vmem:[#allocation2 + $0x100] sm:$0x3]  ;;  %v2797_v25 = vsel %vm389_vm3, %v440_v11, %v441_v12  ;;  %v445_v26 = vrot.slane %v2784_v14, 1  ;;  %v446_v33 = vrot.slane %v2786_v15, 1 }
  0x42   : > { %4409 = vst [vmem:[#allocation21_spill] sm:$0xff] %v2797_v25  ;;  %v2803_v38 = vld [vmem:[#allocation2 + $0x120] sm:$0xff]  ;;  %v2805_v39 = vld [vmem:[#allocation2 + $0x128] sm:$0xff]  ;;  %v2808_v53 = vsel %vm389_vm3, %v436_v62, %v438_v18  ;;  %v443_v60 = vrot.slane %v2794_v22, 1  ;;  %v2813_v4 = vld [vmem:[#allocation2 + $0x118] sm:$0x3] }
  0x43   : > { %4410 = vst [vmem:[#allocation22_spill] sm:$0xff] %v2808_v53  ;;  %v2816_v11 = vsel %vm389_vm3, %v445_v26, %v446_v33  ;;  %v2824_v62 = vld [vmem:[#allocation2 + $0x140] sm:$0xff]  ;;  %v2832_v26 = vld [vmem:[#allocation2 + $0x130] sm:$0x3]  ;;  %v2860_v52 = vld [vmem:[#allocation2 + $0x168] sm:$0xff] }
  0x44   : > { %488 = vrot.lane.b32.xlu1 %v2713_v21, %s2424_s29  ;;  %4411 = vst [vmem:[#allocation23_spill] sm:$0xff] %v2816_v11  ;;  %v2827_v18 = vsel %vm389_vm3, %v441_v12, %v443_v60  ;;  %v2841_v12 = vld [vmem:[#allocation2 + $0x150] sm:$0xff]  ;;  %v2843_v60 = vld [vmem:[#allocation2 + $0x158] sm:$0xff]  ;;  %v453_v21 = vrot.slane %v2832_v26, 1  ;;  %v465_v57 = vrot.slane %v2860_v52, 1 }
  0x45   : > { %494 = vrot.lane.b32.xlu0 %v2721_v24, %s2424_s29  ;;  %4412 = vst [vmem:[#allocation24_spill] sm:$0xff] %v2827_v18  ;;  %v460_v5 = vrot.slane %v2841_v12, 1 }
  0x48   : > { %492 = vrot.lane.b32.xlu1 %v2732_v29, %s2424_s29  ;;  %v456_v29 = vrot.slane %v2824_v62, 1 }
  0x49   : > { %498 = vrot.lane.b32.xlu0 %v2740_v36, %s2424_s29  ;;  %v448_v36 = vrot.slane %v2813_v4, 1 }
  0x4b   : > { %v2846_v16 = vsel %vm389_vm3, %v446_v33, %v448_v36  ;;  %v2862_v36 = vld [vmem:[#allocation2 + $0x170] sm:$0xff] }
  0x4c   : > { %496 = vrot.lane.b32.xlu1 %v2751_v50, %s2424_s29  ;;  %4414 = vst [vmem:[#allocation26_spill] sm:$0xff] %v2846_v16 }
  0x4d   : > { %502 = vrot.lane.b32.xlu0 %v2759_v58, %s2424_s29  ;;  %v450_v58 = vrot.slane %v2803_v38, 1 }
  0x50   : > { %500 = vrot.lane.b32.xlu1 %v2770_v3, %s2424_s29  ;;  %v2822_v3 = vld [vmem:[#allocation2 + $0x138] sm:$0xff] }
  0x51   : > { %506 = vrot.lane.b32.xlu0 %v2778_v10, %s2424_s29  ;;  %v455_v24 = vrot.slane %v2822_v3, 1 }
  0x53   : > { %v2854_v61 = vsel %vm389_vm3, %v455_v24, %v456_v29  ;;  %v2871_v24 = vld [vmem:[#allocation2 + $0x160] sm:$0x3] }
  0x54   : > { %504 = vrot.lane.b32.xlu1 %v2789_v17, %s2424_s29  ;;  %v451_v17 = vrot.slane %v2805_v39, 1  ;;  %4415 = vst [vmem:[#allocation27_spill] sm:$0xff] %v2854_v61 }
  0x55   : > { %510 = vrot.lane.b32.xlu0 %v2797_v25, %s2424_s29  ;;  %v466_v25 = vrot.slane %v2862_v36, 1 }
  0x56   : > { %v2835_v50 = vsel %vm389_vm3, %v450_v58, %v451_v17  ;;  %v2851_v58 = vld [vmem:[#allocation2 + $0x148] sm:$0x3]  ;;  %v2865_v33 = vsel %vm389_vm3, %v451_v17, %v453_v21  ;;  %v463_v17 = vrot.slane %v2871_v24, 1 }
  0x57   : > { %4413 = vst [vmem:[#allocation25_spill] sm:$0xff] %v2835_v50 }
  0x58   : > { %508 = vrot.lane.b32.xlu1 %v2808_v53, %s2424_s29  ;;  %v254_v53 = vld [vmem:[%s2545_s28 + $0xf8] sm:$0xff] }
  0x59   : > { %514 = vrot.lane.b32.xlu0 %v2816_v11, %s2424_s29  ;;  %v461_v11 = vrot.slane %v2843_v60, 1  ;;  %286 = vst.msk [vmem:[#allocation2 + $0x189] sm:$0xff] %vm180_vm0, %v254_v53  ;;  %v570_v53 = vrot.slane %v2560_v9, 2 }
  0x5c   : > { %512 = vrot.lane.b32.xlu1 %v2827_v18, %s2424_s29  ;;  %v253_v18 = vld [vmem:[%s2545_s28 + $0xf0] sm:$0xff] }
  0x5d   : > { %518 = vrot.lane.b32.xlu0 %v2835_v50, %s2424_s29  ;;  %v458_v50 = vrot.slane %v2851_v58, 1  ;;  %285 = vst.msk [vmem:[#allocation2 + $0x181] sm:$0xff] %vm180_vm0, %v253_v18  ;;  %v567_v18 = vrot.slane %v2556_v7, 2  ;;  %v572_v7 = vrot.slane %v2598_v30, 2 }
  0x5f   : > { %v2882_v21 = vsel %vm389_vm3, %v456_v29, %v458_v50  ;;  %v2899_v29 = vsel %vm389_vm3, %v461_v11, %v463_v17  ;;  %v577_v17 = vrot.slane %v2602_v32, 2 }
  0x60   : > { %516 = vrot.lane.b32.xlu1 %v2846_v16, %s2424_s29  ;;  %v2875_v16 = vsel %vm389_vm3, %v460_v5, %v461_v11  ;;  %4417 = vst [vmem:[#allocation29_spill] sm:$0xff] %v2882_v21  ;;  %v2890_v5 = vsel %vm389_vm3, %v465_v57, %v466_v25  ;;  %4419 = vst [vmem:[#allocation31_spill] sm:$0xff] %v2899_v29  ;;  %v569_v57 = vsel %vm566_vm4, %v567_v18, %v568_v46 }
  0x61   : > { %522 = vrot.lane.b32.xlu0 %v2854_v61, %s2424_s29  ;;  %4416 = vst [vmem:[#allocation28_spill] sm:$0xff] %v2875_v16  ;;  %v2887_v61 = vld [vmem:[#allocation2 + $0x178] sm:$0x3]  ;;  %4418 = vst [vmem:[#allocation30_spill] sm:$0xff] %v2890_v5  ;;  %v2915_v11 = vsel %vm566_vm4, %v572_v7, %v573_v8  ;;  %v578_v18 = vrot.slane %v2609_v35, 2 }
  0x62   : > { %v468_v50 = vrot.slane %v2887_v61, 1 }
  0x63   : > { %v2926_v9 = vsel %vm566_vm4, %v577_v17, %v578_v18  ;;  %v592_v17 = vrot.slane %v2652_v55, 2 }
  0x64   : > { %520 = vrot.lane.b32.xlu1 %v2865_v33, %s2424_s29 }
  0x65   : > { %526 = vrot.lane.b32.xlu0 %v2875_v16, %s2424_s29  ;;  %v2910_v16 = vsel %vm389_vm3, %v466_v25, %v468_v50  ;;  %v575_v25 = vrot.slane %v2612_v37, 2  ;;  %v582_v50 = vrot.slane %v2617_v40, 2 }
  0x66   : > { %4420 = vst [vmem:[#allocation32_spill] sm:$0xff] %v2910_v16 }
  0x67   : > { %v2932_v7 = vsel %vm566_vm4, %v573_v8, %v575_v25  ;;  %v585_v8 = vrot.slane %v2643_v51, 2  ;;  %v593_v25 = vrot.slane %v2654_v56, 2 }
  0x68   : > { %524 = vrot.lane.b32.xlu1 %v2882_v21, %s2424_s29 }
  0x69   : > { %530 = vrot.lane.b32.xlu0 %v2890_v5, %s2424_s29  ;;  %v571_v5 = vsel %vm566_vm4, %v568_v46, %v570_v53  ;;  %v587_v46 = vrot.slane %v2633_v47, 2  ;;  %v588_v53 = vrot.slane %v2635_v48, 2  ;;  %v2964_v51 = vsel %vm566_vm4, %v592_v17, %v593_v25 }
  0x6a   : > { %4421 = vst [vmem:[#allocation33_spill] sm:$0xff] %v2964_v51  ;;  %v603_v17 = vrot.slane %v2710_v20, 2 }
  0x6c   : > { %528 = vrot.lane.b32.xlu1 %v2899_v29, %s2424_s29 }
  0x6d   : > { %647 = vrot.lane.b32.xlu0 %v569_v57, %s2425_s30  ;;  %v583_v57 = vrot.slane %v2619_v41, 2 }
  0x6f   : > { %v2938_v37 = vsel %vm566_vm4, %v582_v50, %v583_v57  ;;  %v2958_v50 = vsel %vm566_vm4, %v583_v57, %v585_v8  ;;  %v595_v57 = vrot.slane %v2692_v13, 2  ;;  %v602_v8 = vrot.slane %v2708_v19, 2 }
  0x70   : > { %532 = vrot.lane.b32.xlu1 %v2910_v16, %s2424_s29  ;;  %v580_v16 = vrot.slane %v2621_v42, 2  ;;  %v2951_v42 = vsel %vm566_vm4, %v587_v46, %v588_v53  ;;  %v598_v46 = vrot.slane %v2672_v1, 2  ;;  %s2431_s29 = smov 32  }
  0x71   : > { %651 = vrot.lane.b32.xlu0 %v2915_v11, %s2425_s30  ;;  %v2984_v21 = vsel %vm566_vm4, %v593_v25, %v595_v57  ;;  %v2990_v13 = vsel %vm566_vm4, %v602_v8, %v603_v17  ;;  %v605_v25 = vrot.slane %v2737_v34, 2  ;;  %v612_v57 = vrot.slane %v2746_v44, 2 }
  0x72   : > { %4424 = vst [vmem:[#allocation36_spill] sm:$0xff] %v2984_v21  ;;  %4425 = vst [vmem:[#allocation37_spill] sm:$0xff] %v2990_v13  ;;  %v613_v8 = vrot.slane %v2748_v45, 2 }
  0x74   : > { %649 = vrot.lane.b32.xlu1 %v571_v5, %s2425_s30  ;;  %v2945_v5 = vsel %vm566_vm4, %v578_v18, %v580_v16  ;;  %v590_v16 = vrot.slane %v2662_v59, 2  ;;  %v597_v18 = vrot.slane %v2670_v0, 2  ;;  %v3016_v34 = vsel %vm566_vm4, %v612_v57, %v613_v8 }
  0x75   : > { %655 = vrot.lane.b32.xlu0 %v2926_v9, %s2425_s30  ;;  %4429 = vst [vmem:[#allocation41_spill] sm:$0xff] %v3016_v34  ;;  %v623_v57 = vrot.slane %v2786_v15, 2 }
  0x76   : > { %v2971_v29 = vsel %vm566_vm4, %v588_v53, %v590_v16  ;;  %v2977_v59 = vsel %vm566_vm4, %v597_v18, %v598_v46  ;;  %v600_v53 = vrot.slane %v2718_v23, 2  ;;  %v607_v16 = vrot.slane %v2727_v27, 2 }
  0x77   : > { %4422 = vst [vmem:[#allocation34_spill] sm:$0xff] %v2971_v29  ;;  %4423 = vst [vmem:[#allocation35_spill] sm:$0xff] %v2977_v59  ;;  %v608_v18 = vrot.slane %v2729_v28, 2 }
  0x78   : > { %653 = vrot.lane.b32.xlu1 %v2932_v7, %s2425_s30 }
  0x79   : > { %659 = vrot.lane.b32.xlu0 %v2938_v37, %s2425_s30  ;;  %v3003_v23 = vsel %vm566_vm4, %v607_v16, %v608_v18  ;;  %v618_v16 = vrot.slane %v2767_v2, 2 }
  0x7a   : > { %4427 = vst [vmem:[#allocation39_spill] sm:$0xff] %v3003_v23 }
  0x7c   : > { %657 = vrot.lane.b32.xlu1 %v2945_v5, %s2425_s30 }
  0x7d   : > { %663 = vrot.lane.b32.xlu0 %v2951_v42, %s2425_s30 }
  0x80   : > { %661 = vrot.lane.b32.xlu1 %v2958_v50, %s2425_s30 }
  0x81   : > { %667 = vrot.lane.b32.xlu0 %v2964_v51, %s2425_s30  ;;  %v2997_v51 = vsel %vm566_vm4, %v598_v46, %v600_v53  ;;  %v610_v46 = vrot.slane %v2756_v54, 2  ;;  %v617_v53 = vrot.slane %v2765_v63, 2 }
  0x82   : > { %4426 = vst [vmem:[#allocation38_spill] sm:$0xff] %v2997_v51 }
  0x83   : > { %v3029_v54 = vsel %vm566_vm4, %v617_v53, %v618_v16  ;;  %v628_v53 = vrot.slane %v2805_v39, 2 }
  0x84   : > { %665 = vrot.lane.b32.xlu1 %v2971_v29, %s2425_s30 }
  0x85   : > { %671 = vrot.lane.b32.xlu0 %v2977_v59, %s2425_s30  ;;  %v3010_v59 = vsel %vm566_vm4, %v603_v17, %v605_v25  ;;  %v615_v17 = vrot.slane %v2775_v6, 2  ;;  %v622_v25 = vrot.slane %v2784_v14, 2 }
  0x86   : > { %4428 = vst [vmem:[#allocation40_spill] sm:$0xff] %v3010_v59 }
  0x87   : > { %v3042_v6 = vsel %vm566_vm4, %v622_v25, %v623_v57  ;;  %v633_v25 = vrot.slane %v2824_v62, 2 }
  0x88   : > { %669 = vrot.lane.b32.xlu1 %v2984_v21, %s2425_s30  ;;  %v643_v21 = vrot.slane %v2862_v36, 2 }
  0x89   : > { %675 = vrot.lane.b32.xlu0 %v2990_v13, %s2425_s30  ;;  %v3023_v13 = vsel %vm566_vm4, %v608_v18, %v610_v46  ;;  %v620_v18 = vrot.slane %v2794_v22, 2  ;;  %v627_v46 = vrot.slane %v2803_v38, 2 }
  0x8a   : > { %4430 = vst [vmem:[#allocation42_spill] sm:$0xff] %v3023_v13 }
  0x8b   : > { %v3055_v22 = vsel %vm566_vm4, %v627_v46, %v628_v53  ;;  %v638_v46 = vrot.slane %v2843_v60, 2 }
  0x8c   : > { %673 = vrot.lane.b32.xlu1 %v2997_v51, %s2425_s30 }
  0x8d   : > { %679 = vrot.lane.b32.xlu0 %v3003_v23, %s2425_s30  ;;  %v3036_v23 = vsel %vm566_vm4, %v613_v8, %v615_v17  ;;  %v625_v8 = vrot.slane %v2813_v4, 2  ;;  %v632_v17 = vrot.slane %v2822_v3, 2 }
  0x8e   : > { %4431 = vst [vmem:[#allocation43_spill] sm:$0xff] %v3036_v23 }
  0x8f   : > { %v3068_v4 = vsel %vm566_vm4, %v632_v17, %v633_v25  ;;  %v642_v17 = vrot.slane %v2860_v52, 2 }
  0x90   : > { %677 = vrot.lane.b32.xlu1 %v3010_v59, %s2425_s30  ;;  %v3062_v59 = vsel %vm566_vm4, %v623_v57, %v625_v8  ;;  %4432 = vst [vmem:[#allocation44_spill] sm:$0xff] %v3068_v4 }
  0x91   : > { %683 = vrot.lane.b32.xlu0 %v3016_v34, %s2425_s30 }
  0x94   : > { %681 = vrot.lane.b32.xlu1 %v3023_v13, %s2425_s30  ;;  %v3049_v13 = vsel %vm566_vm4, %v618_v16, %v620_v18  ;;  %v630_v16 = vrot.slane %v2832_v26, 2  ;;  %v637_v18 = vrot.slane %v2841_v12, 2  ;;  %v635_v26 = vrot.slane %v2851_v58, 2 }
  0x95   : > { %687 = vrot.lane.b32.xlu0 %v3029_v54, %s2425_s30  ;;  %v3072_v51 = vpop.permute.xlu0 %470  ;;  %v640_v58 = vrot.slane %v2871_v24, 2 }
  0x96   : > { %v3077_v57 = vsel %vm566_vm4, %v628_v53, %v630_v16  ;;  %v3083_v8 = vsel %vm566_vm4, %v637_v18, %v638_v46  ;;  %v3092_v53 = vsel %vm566_vm4, %v633_v25, %v635_v26  ;;  %v3100_v18 = vsel %vm566_vm4, %v642_v17, %v643_v21 }
  0x97   : > { %4434 = vst [vmem:[#allocation46_spill] sm:$0xff] %v3100_v18  ;;  %v645_v25 = vrot.slane %v2887_v61, 2 }
  0x98   : > { %685 = vrot.lane.b32.xlu1 %v3036_v23, %s2425_s30 }
  0x99   : > { %691 = vrot.lane.b32.xlu0 %v3042_v6, %s2425_s30  ;;  %v3087_v29 = vpop.permute.xlu0 %472  ;;  %v3119_v17 = vsel %vm566_vm4, %v643_v21, %v645_v25 }
  0x9a   : > { %4433 = vst [vmem:[#allocation45_spill] sm:$0xff] %v3087_v29  ;;  %v3107_v29 = vsel %vm566_vm4, %v638_v46, %v640_v58  ;;  %4436 = vst [vmem:[#allocation48_spill] sm:$0xff] %v3119_v17 }
  0x9c   : > { %689 = vrot.lane.b32.xlu1 %v3049_v13, %s2425_s30 }
  0x9d   : > { %695 = vrot.lane.b32.xlu0 %v3055_v22, %s2425_s30 }
  0xa0   : > { %693 = vrot.lane.b32.xlu1 %v3062_v59, %s2425_s30 }
  0xa1   : > { %699 = vrot.lane.b32.xlu0 %v3068_v4, %s2425_s30 }
  0xa4   : > { %697 = vrot.lane.b32.xlu1 %v3077_v57, %s2425_s30 }
  0xa5   : > { %703 = vrot.lane.b32.xlu0 %v3083_v8, %s2425_s30 }
  0xa6   : > { %v3097_v16 = vpop.permute.xlu1 %474 }
  0xa7   : > { %v3102_v4 = vpop.permute.xlu0 %478 }
  0xa8   : > { %701 = vrot.lane.b32.xlu1 %v3092_v53, %s2425_s30 }
  0xa9   : > { %707 = vrot.lane.b32.xlu0 %v3100_v18, %s2425_s30 }
  0xaa   : > { %v3112_v24 = vpop.permute.xlu1 %476 }
  0xab   : > { %v3114_v26 = vpop.permute.xlu0 %482 }
  0xac   : > { %4435 = vst [vmem:[#allocation47_spill] sm:$0xff] %v3114_v26  ;;  %705 = vrot.lane.b32.xlu1 %v3107_v29, %s2425_s30 }
  0xad   : > { %745 = vrot.lane.b32.xlu0 %v2598_v30, %s2426_s4 }
  0xae   : > { %v3123_v46 = vpop.permute.xlu1 %480 }
  0xaf   : > { %v3125_v61 = vpop.permute.xlu0 %486 }
  0xb0   : > { %4437 = vst [vmem:[#allocation49_spill] sm:$0xff] %v3125_v61  ;;  %709 = vrot.lane.b32.xlu1 %v3119_v17, %s2425_s30  ;;  %s162_s30 = sand.u32 1, %s2413_s13  }
  0xb1   : > { %749 = vrot.lane.b32.xlu0 %v2602_v32, %s2426_s4  ;;  %s2018_s11 = scalar_lea.sflag [#allocation4], %s162_s30 }
  0xb2   : > { %v3131_v58 = vpop.permute.xlu1 %484 }
  0xb3   : > { %4438 = vst [vmem:[#allocation50_spill] sm:$0xff] %v3131_v58  ;;  %v3133_v26 = vpop.permute.xlu0 %490 }
  0xb4   : > { %4439 = vst [vmem:[#allocation51_spill] sm:$0xff] %v3133_v26  ;;  %747 = vrot.lane.b32.xlu1 %v2600_v31, %s2426_s4 }
  0xb5   : > { %753 = vrot.lane.b32.xlu0 %v2617_v40, %s2426_s4 }
  0xb6   : > { %v3139_v30 = vpop.permute.xlu1 %488 }
  0xb7   : > { %4440 = vst [vmem:[#allocation52_spill] sm:$0xff] %v3139_v30  ;;  %v3141_v21 = vpop.permute.xlu0 %494 }
  0xb8   : > { %4441 = vst [vmem:[#allocation53_spill] sm:$0xff] %v3141_v21  ;;  %751 = vrot.lane.b32.xlu1 %v2609_v35, %s2426_s4 }
  0xb9   : > { %757 = vrot.lane.b32.xlu0 %v2633_v47, %s2426_s4 }
  0xba   : > { %v3147_v25 = vpop.permute.xlu1 %492 }
  0xbb   : > { %4442 = vst [vmem:[#allocation54_spill] sm:$0xff] %v3147_v25  ;;  %v3149_v61 = vpop.permute.xlu0 %498 }
  0xbc   : > { %4443 = vst [vmem:[#allocation55_spill] sm:$0xff] %v3149_v61  ;;  %755 = vrot.lane.b32.xlu1 %v2619_v41, %s2426_s4 }
  0xbd   : > { %761 = vrot.lane.b32.xlu0 %v2652_v55, %s2426_s4 }
  0xbe   : > { %v3155_v31 = vpop.permute.xlu1 %496 }
  0xbf   : > { %4444 = vst [vmem:[#allocation56_spill] sm:$0xff] %v3155_v31  ;;  %v3157_v26 = vpop.permute.xlu0 %502 }
  0xc0   : > { %759 = vrot.lane.b32.xlu1 %v2635_v48, %s2426_s4 }
  0xc1   : > { %765 = vrot.lane.b32.xlu0 %v2670_v0, %s2426_s4 }
  0xc2   : > { %v3163_v21 = vpop.permute.xlu1 %500 }
  0xc3   : > { %4445 = vst [vmem:[#allocation57_spill] sm:$0xff] %v3163_v21  ;;  %v3165_v25 = vpop.permute.xlu0 %506 }
  0xc4   : > { %763 = vrot.lane.b32.xlu1 %v2654_v56, %s2426_s4 }
  0xc5   : > { %769 = vrot.lane.b32.xlu0 %v2708_v19, %s2426_s4 }
  0xc6   : > { %v3171_v61 = vpop.permute.xlu1 %504 }
  0xc7   : > { %v3173_v31 = vpop.permute.xlu0 %510 }
  0xc8   : > { %767 = vrot.lane.b32.xlu1 %v2672_v1, %s2426_s4 }
  0xc9   : > { %773 = vrot.lane.b32.xlu0 %v2727_v27, %s2426_s4 }
  0xca   : > { %v3179_v0 = vpop.permute.xlu1 %508 }
  0xcb   : > { %v3181_v21 = vpop.permute.xlu0 %514 }
  0xcc   : > { %4446 = vst [vmem:[#allocation58_spill] sm:$0xff] %v3181_v21  ;;  %771 = vrot.lane.b32.xlu1 %v2710_v20, %s2426_s4 }
  0xcd   : > { %777 = vrot.lane.b32.xlu0 %v2746_v44, %s2426_s4 }
  0xce   : > { %v3187_v19 = vpop.permute.xlu1 %512 }
  0xcf   : > { %v3189_v30 = vpop.permute.xlu0 %518 }
  0xd0   : > { %4447 = vst [vmem:[#allocation59_spill] sm:$0xff] %v3189_v30  ;;  %775 = vrot.lane.b32.xlu1 %v2729_v28, %s2426_s4 }
  0xd1   : > { %781 = vrot.lane.b32.xlu0 %v2765_v63, %s2426_s4 }
  0xd2   : > { %v3195_v1 = vpop.permute.xlu1 %516 }
  0xd3   : > { %4448 = vst [vmem:[#allocation60_spill] sm:$0xff] %v3195_v1  ;;  %v3197_v58 = vpop.permute.xlu0 %522 }
  0xd4   : > { %4449 = vst [vmem:[#allocation61_spill] sm:$0xff] %v3197_v58  ;;  %779 = vrot.lane.b32.xlu1 %v2748_v45, %s2426_s4 }
  0xd5   : > { %785 = vrot.lane.b32.xlu0 %v2784_v14, %s2426_s4 }
  0xd6   : > { %v3203_v20 = vpop.permute.xlu1 %520 }
  0xd7   : > { %4450 = vst [vmem:[#allocation62_spill] sm:$0xff] %v3203_v20  ;;  %v3205_v44 = vpop.permute.xlu0 %526 }
  0xd8   : > { %4451 = vst [vmem:[#allocation63_spill] sm:$0xff] %v3205_v44  ;;  %783 = vrot.lane.b32.xlu1 %v2767_v2, %s2426_s4 }
  0xd9   : > { %789 = vrot.lane.b32.xlu0 %v2803_v38, %s2426_s4 }
  0xda   : > { %v3211_v30 = vpop.permute.xlu1 %524 }
  0xdb   : > { %4452 = vst [vmem:[#allocation64_spill] sm:$0xff] %v3211_v30  ;;  %v3213_v1 = vpop.permute.xlu0 %530 }
  0xdc   : > { %4453 = vst [vmem:[#allocation65_spill] sm:$0xff] %v3213_v1  ;;  %787 = vrot.lane.b32.xlu1 %v2786_v15, %s2426_s4 }
  0xdd   : > { %793 = vrot.lane.b32.xlu0 %v2822_v3, %s2426_s4 }
  0xde   : > { %v3219_v45 = vpop.permute.xlu1 %528 }
  0xdf   : > { %4454 = vst [vmem:[#allocation66_spill] sm:$0xff] %v3219_v45  ;;  %v3221_v58 = vpop.permute.xlu0 %647  ;;  %v3237_v45 = vld [vmem:[#allocation2 + $0x180] sm:$0xff] }
  0xe0   : > { %791 = vrot.lane.b32.xlu1 %v2805_v39, %s2426_s4  ;;  %4456 = vst [vmem:[#allocation68_spill] sm:$0xff] %v3237_v45 }
  0xe1   : > { %797 = vrot.lane.b32.xlu0 %v2841_v12, %s2426_s4 }
  0xe2   : > { %v3227_v44 = vpop.permute.xlu1 %532 }
  0xe3   : > { %4455 = vst [vmem:[#allocation67_spill] sm:$0xff] %v3227_v44  ;;  %v3229_v30 = vpop.permute.xlu0 %651 }
  0xe4   : > { %795 = vrot.lane.b32.xlu1 %v2824_v62, %s2426_s4 }
  0xe5   : > { %801 = vrot.lane.b32.xlu0 %v2860_v52, %s2426_s4  ;;  %v3251_v52 = vld [vmem:[#allocation2 + $0x188] sm:$0xff] }
  0xe6   : > { %v3235_v1 = vpop.permute.xlu1 %649  ;;  %4458 = vst [vmem:[#allocation70_spill] sm:$0xff] %v3251_v52 }
  0xe7   : > { %v3239_v20 = vpop.permute.xlu0 %655 }
  0xe8   : > { %799 = vrot.lane.b32.xlu1 %v2843_v60, %s2426_s4 }
  0xe9   : > { %805 = vrot.lane.b32.xlu0 %v3237_v45, %s2426_s4 }
  0xea   : > { %v3245_v44 = vpop.permute.xlu1 %653 }
  0xeb   : > { %v3247_v21 = vpop.permute.xlu0 %659 }
  0xec   : > { %4457 = vst [vmem:[#allocation69_spill] sm:$0xff] %v3247_v21  ;;  %803 = vrot.lane.b32.xlu1 %v2862_v36, %s2426_s4 }
  0xed   : > { %847 = vrot.lane.b32.xlu0 %v2624_v43, %s2427_s5 }
  0xee   : > { %v3255_v17 = vpop.permute.xlu1 %657 }
  0xef   : > { %v3257_v18 = vpop.permute.xlu0 %663 }
  0xf0   : > { %4459 = vst [vmem:[#allocation71_spill] sm:$0xff] %v3257_v18  ;;  %807 = vrot.lane.b32.xlu1 %v3251_v52, %s2426_s4  ;;  %v4464_v18 = vld [vmem:[#allocation22_spill] sm:$0xff]  ;;  %s2126_s4 = sshll.u32 %s162_s30, 4 }
  0xf1   : > { %879 = vrot.lane.b32.xlu0 %v2778_v10, %s2427_s5 }
  0xf2   : > { %v3263_v21 = vpop.permute.xlu1 %661 }
  0xf3   : > { %4460 = vst [vmem:[#allocation72_spill] sm:$0xff] %v3263_v21  ;;  %v3265_v45 = vpop.permute.xlu0 %667 }
  0xf4   : > { %4461 = vst [vmem:[#allocation73_spill] sm:$0xff] %v3265_v45  ;;  %849 = vrot.lane.b32.xlu1 %v2638_v49, %s2427_s5 }
  0xf5   : > { %948 = vrot.lane.b32.xlu0 %v2915_v11, %s2428_s6 }
  0xf6   : > { %v3271_v43 = vpop.permute.xlu1 %665 }
  0xf7   : > { %4462 = vst [vmem:[#allocation74_spill] sm:$0xff] %v3271_v43  ;;  %v3273_v36 = vpop.permute.xlu0 %671  ;;  %v1611_v43 = vld [vmem:[%s4306_s1 + $0x18] sm:$0xff] }
  0xf8   : > { %4463 = vst [vmem:[#allocation75_spill] sm:$0xff] %v3273_v36  ;;  %881 = vrot.lane.b32.xlu1 %v4464_v18, %s2427_s5  ;;  %v4469_v36 = vld [vmem:[#allocation6_spill] sm:$0xff] }
  0xf9   : > { %950 = vrot.lane.b32.xlu0 %v2932_v7, %s2428_s6 }
  0xfa   : > { %v3279_v10 = vpop.permute.xlu1 %669 }
  0xfb   : > { %4465 = vst [vmem:[#allocation76_spill] sm:$0xff] %v3279_v10  ;;  %v3281_v45 = vpop.permute.xlu0 %675 }
  0xfc   : > { %4466 = vst [vmem:[#allocation77_spill] sm:$0xff] %v3281_v45  ;;  %980 = vrot.lane.b32.xlu1 %v3016_v34, %s2428_s6  ;;  %v4472_v34 = vld [vmem:[#allocation8_spill] sm:$0xff] }
  0xfd   : > { %1046 = vrot.lane.b32.xlu0 %v2602_v32, %s2429_s7  ;;  %v1608_v32 = vld [vmem:[%s4306_s1] sm:$0xff] }
  0xfe   : > { %v3287_v49 = vpop.permute.xlu1 %673 }
  0xff   : > { %4467 = vst [vmem:[#allocation78_spill] sm:$0xff] %v3287_v49  ;;  %v3289_v11 = vpop.permute.xlu0 %679  ;;  %v1609_v49 = vld [vmem:[%s4306_s1 + $0x8] sm:$0xff] }
 0x100   : > { %982 = vrot.lane.b32.xlu1 %v3036_v23, %s2428_s6 }
 0x101   : > { %1048 = vrot.lane.b32.xlu0 %v2609_v35, %s2429_s7 }
 0x102   : > { %v3295_v7 = vpop.permute.xlu1 %677 }
 0x103   : > { %4468 = vst [vmem:[#allocation79_spill] sm:$0xff] %v3295_v7  ;;  %v3297_v45 = vpop.permute.xlu0 %683  ;;  %v2265_v7 = vpack.c.bf16 %v1609_v49, %v1608_v32 }
 0x104   : > { %1078 = vrot.lane.b32.xlu1 %v2765_v63, %s2429_s7  ;;  %v1610_v63 = vld [vmem:[%s4306_s1 + $0x10] sm:$0xff] }
 0x105   : > { %1148 = vrot.lane.b32.xlu0 %v4469_v36, %s2430_s17  ;;  %2266 = vmatprep.subr.bf16.mxu0 %v2265_v7  ;;  %v2269_v32 = vpack.c.bf16 %v1611_v43, %v1610_v63 }
 0x106   : > { %v3309_v35 = vpop.permute.xlu1 %681  ;;  %2268 = vmatpush3.bf16.msra.mxu0 %v2265_v7  ;;  %2273 = vmatprep.subr.bf16.mxu1 %v2265_v7 }
 0x107   : > { %v3311_v10 = vpop.permute.xlu0 %687  ;;  %2276 = vmatpush3.bf16.msra.mxu1 %v2265_v7  ;;  %2270 = vmatprep.subr.bf16.mxu0 %v2269_v32 }
 0x108   : > { %1080 = vrot.lane.b32.xlu1 %v2767_v2, %s2429_s7  ;;  %v4471_v2 = vld [vmem:[#allocation21_spill] sm:$0xff]  ;;  %2274 = vmatprep.subr.bf16.mxu1 %v2269_v32 }
 0x109   : > { %851 = vrot.lane.b32.xlu0 %v4469_v36, %s2427_s5  ;;  %v1612_v36 = vld [vmem:[%s4306_s1 + $0x20] sm:$0xf] }
 0x10a   : > { %v3323_v49 = vpop.permute.xlu1 %685  ;;  %2272 = vmatpush3.bf16.msra.mxu0 %v2269_v32 }
 0x10b   : > { %v3325_v23 = vpop.permute.xlu0 %691  ;;  %2277 = vmatpush3.bf16.msra.mxu1 %v2269_v32  ;;  %2215 = vmatprep.subr.msk.mxu0 %vm1710_vm5, %v1612_v36  ;;  %v4476_v32 = vld [vmem:[#allocation24_spill] sm:$0xff] }
 0x10c   : > { %4470 = vst [vmem:[#allocation6_spill] sm:$0xff] %v3325_v23  ;;  %1180 = vrot.lane.b32.xlu1 %v4471_v2, %s2430_s17  ;;  %2275 = vmatprep.subr.msk.mxu1 %vm1710_vm5, %v1612_v36  ;;  %v2327_v23 = vld [vmem:[#allocation2] sm:$0xff] }
 0x10d   : > { %1150 = vrot.lane.b32.xlu0 %v4472_v34, %s2430_s17 }
 0x10e   : > { %v3331_v18 = vpop.permute.xlu1 %689  ;;  %2216 = vmatpush3.msk.msra.mxu0 %vm1710_vm5, %v1612_v36 }
 0x10f   : > { %v3336_v43 = vpop.permute.xlu0 %695  ;;  %2278 = vmatpush3.msk.msra.mxu1 %vm1710_vm5, %v1612_v36 }
 0x110   : > { %4473 = vst [vmem:[#allocation21_spill] sm:$0xff] %v3336_v43  ;;  %883 = vrot.lane.b32.xlu1 %v4471_v2, %s2427_s5 }
 0x111   : > { %1249 = vrot.lane.b32.xlu0 %v2926_v9, %s2431_s29 }
 0x112   : > { %v3342_v7 = vpop.permute.xlu1 %693 }
 0x113   : > { %4474 = vst [vmem:[#allocation8_spill] sm:$0xff] %v3342_v7  ;;  %v3344_v63 = vpop.permute.xlu0 %699 }
 0x114   : > { %4475 = vst [vmem:[#allocation80_spill] sm:$0xff] %v3344_v63  ;;  %1182 = vrot.lane.b32.xlu1 %v4476_v32, %s2430_s17 }
 0x115   : > { %853 = vrot.lane.b32.xlu0 %v4472_v34, %s2427_s5 }
 0x116   : > { %v3350_v43 = vpop.permute.xlu1 %697 }
 0x117   : > { %4477 = vst [vmem:[#allocation24_spill] sm:$0xff] %v3350_v43  ;;  %v3352_v2 = vpop.permute.xlu0 %703 }
 0x118   : > { %4478 = vst [vmem:[#allocation81_spill] sm:$0xff] %v3352_v2  ;;  %1281 = vrot.lane.b32.xlu1 %v3029_v54, %s2431_s29 }
 0x119   : > { %952 = vrot.lane.b32.xlu0 %v2926_v9, %s2428_s6 }
 0x11a   : > { %v3358_v7 = vpop.permute.xlu1 %701 }
 0x11b   : > { %4479 = vst [vmem:[#allocation82_spill] sm:$0xff] %v3358_v7  ;;  %v3360_v36 = vpop.permute.xlu0 %707  ;;  %v4488_v7 = vld [vmem:[#allocation23_spill] sm:$0xff] }
 0x11c   : > { %4480 = vst [vmem:[#allocation83_spill] sm:$0xff] %v3360_v36  ;;  %885 = vrot.lane.b32.xlu1 %v4476_v32, %s2427_s5 }
 0x11d   : > { %1251 = vrot.lane.b32.xlu0 %v2945_v5, %s2431_s29 }
 0x11e   : > { %v3366_v34 = vpop.permute.xlu1 %705 }
 0x11f   : > { %4481 = vst [vmem:[#allocation84_spill] sm:$0xff] %v3366_v34  ;;  %v3368_v63 = vpop.permute.xlu0 %745 }
 0x120   : > { %984 = vrot.lane.b32.xlu1 %v3029_v54, %s2428_s6 }
 0x121   : > { %954 = vrot.lane.b32.xlu0 %v2945_v5, %s2428_s6 }
 0x122   : > { %v3374_v9 = vpop.permute.xlu1 %709 }
 0x123   : > { %4482 = vst [vmem:[#allocation85_spill] sm:$0xff] %v3374_v9  ;;  %v3376_v2 = vpop.permute.xlu0 %749  ;;  %v4484_v9 = vld [vmem:[#allocation7_spill] sm:$0xff] }
 0x124   : > { %1283 = vrot.lane.b32.xlu1 %v3049_v13, %s2431_s29 }
 0x125   : > { %1050 = vrot.lane.b32.xlu0 %v2617_v40, %s2429_s7 }
 0x126   : > { %v3382_v32 = vpop.permute.xlu1 %747 }
 0x127   : > { %v3384_v36 = vpop.permute.xlu0 %753 }
 0x128   : > { %986 = vrot.lane.b32.xlu1 %v3049_v13, %s2428_s6 }
 0x129   : > { %1052 = vrot.lane.b32.xlu0 %v2619_v41, %s2429_s7 }
 0x12a   : > { %v3390_v5 = vpop.permute.xlu1 %751 }
 0x12b   : > { %v3392_v54 = vpop.permute.xlu0 %757 }
 0x12c   : > { %4483 = vst [vmem:[#allocation86_spill] sm:$0xff] %v3392_v54  ;;  %1082 = vrot.lane.b32.xlu1 %v2784_v14, %s2429_s7  ;;  %v4489_v14 = vld [vmem:[#allocation10_spill] sm:$0xff]  ;;  %v4512_v54 = vld [vmem:[#allocation11_spill] sm:$0xff] }
 0x12d   : > { %1152 = vrot.lane.b32.xlu0 %v4484_v9, %s2430_s17 }
 0x12e   : > { %v3398_v40 = vpop.permute.xlu1 %755 }
 0x12f   : > { %v3400_v34 = vpop.permute.xlu0 %761 }
 0x130   : > { %4485 = vst [vmem:[#allocation7_spill] sm:$0xff] %v3400_v34  ;;  %1084 = vrot.lane.b32.xlu1 %v2786_v15, %s2429_s7 }
 0x131   : > { %855 = vrot.lane.b32.xlu0 %v4484_v9, %s2427_s5 }
 0x132   : > { %v3406_v41 = vpop.permute.xlu1 %759 }
 0x133   : > { %4486 = vst [vmem:[#allocation87_spill] sm:$0xff] %v3406_v41  ;;  %v3408_v13 = vpop.permute.xlu0 %765 }
 0x134   : > { %4487 = vst [vmem:[#allocation88_spill] sm:$0xff] %v3408_v13  ;;  %1184 = vrot.lane.b32.xlu1 %v4488_v7, %s2430_s17  ;;  %v4494_v13 = vld [vmem:[#allocation26_spill] sm:$0xff] }
 0x135   : > { %1154 = vrot.lane.b32.xlu0 %v4489_v14, %s2430_s17 }
 0x136   : > { %v3414_v43 = vpop.permute.xlu1 %763 }
 0x137   : > { %4490 = vst [vmem:[#allocation23_spill] sm:$0xff] %v3414_v43  ;;  %v3416_v21 = vpop.permute.xlu0 %769 }
 0x138   : > { %4491 = vst [vmem:[#allocation10_spill] sm:$0xff] %v3416_v21  ;;  %887 = vrot.lane.b32.xlu1 %v4488_v7, %s2427_s5 }
 0x139   : > { %1253 = vrot.lane.b32.xlu0 %v2938_v37, %s2431_s29 }
 0x13a   : > { %v3422_v15 = vpop.permute.xlu1 %767 }
 0x13b   : > { %4492 = vst [vmem:[#allocation89_spill] sm:$0xff] %v3422_v15  ;;  %v3424_v9 = vpop.permute.xlu0 %773  ;;  %v4502_v15 = vld [vmem:[#allocation9_spill] sm:$0xff] }
 0x13c   : > { %4493 = vst [vmem:[#allocation90_spill] sm:$0xff] %v3424_v9  ;;  %1186 = vrot.lane.b32.xlu1 %v4494_v13, %s2430_s17 }
 0x13d   : > { %857 = vrot.lane.b32.xlu0 %v4489_v14, %s2427_s5 }
 0x13e   : > { %v3430_v34 = vpop.permute.xlu1 %771 }
 0x13f   : > { %4495 = vst [vmem:[#allocation26_spill] sm:$0xff] %v3430_v34  ;;  %v3432_v43 = vpop.permute.xlu0 %777 }
 0x140   : > { %1285 = vrot.lane.b32.xlu1 %v3042_v6, %s2431_s29 }
 0x141   : > { %956 = vrot.lane.b32.xlu0 %v2938_v37, %s2428_s6 }
 0x142   : > { %v3438_v7 = vpop.permute.xlu1 %775 }
 0x143   : > { %4496 = vst [vmem:[#allocation91_spill] sm:$0xff] %v3438_v7  ;;  %v3440_v21 = vpop.permute.xlu0 %781 }
 0x144   : > { %889 = vrot.lane.b32.xlu1 %v4494_v13, %s2427_s5 }
 0x145   : > { %1255 = vrot.lane.b32.xlu0 %v2958_v50, %s2431_s29 }
 0x146   : > { %v3446_v14 = vpop.permute.xlu1 %779 }
 0x147   : > { %v3448_v9 = vpop.permute.xlu0 %785 }
 0x148   : > { %988 = vrot.lane.b32.xlu1 %v3042_v6, %s2428_s6 }
 0x149   : > { %958 = vrot.lane.b32.xlu0 %v2958_v50, %s2428_s6 }
 0x14a   : > { %v3454_v37 = vpop.permute.xlu1 %783 }
 0x14b   : > { %v3456_v7 = vpop.permute.xlu0 %789 }
 0x14c   : > { %4497 = vst [vmem:[#allocation92_spill] sm:$0xff] %v3456_v7  ;;  %1287 = vrot.lane.b32.xlu1 %v3062_v59, %s2431_s29 }
 0x14d   : > { %1054 = vrot.lane.b32.xlu0 %v2633_v47, %s2429_s7 }
 0x14e   : > { %v3462_v13 = vpop.permute.xlu1 %787 }
 0x14f   : > { %4498 = vst [vmem:[#allocation93_spill] sm:$0xff] %v3462_v13  ;;  %v3464_v34 = vpop.permute.xlu0 %793 }
 0x150   : > { %4499 = vst [vmem:[#allocation94_spill] sm:$0xff] %v3464_v34  ;;  %990 = vrot.lane.b32.xlu1 %v3062_v59, %s2428_s6 }
 0x151   : > { %1056 = vrot.lane.b32.xlu0 %v2635_v48, %s2429_s7 }
 0x152   : > { %v3470_v50 = vpop.permute.xlu1 %791 }
 0x153   : > { %4500 = vst [vmem:[#allocation95_spill] sm:$0xff] %v3470_v50  ;;  %v3472_v6 = vpop.permute.xlu0 %797 }
 0x154   : > { %4501 = vst [vmem:[#allocation96_spill] sm:$0xff] %v3472_v6  ;;  %1086 = vrot.lane.b32.xlu1 %v2803_v38, %s2429_s7  ;;  %v4507_v6 = vld [vmem:[#allocation25_spill] sm:$0xff]  ;;  %v4508_v38 = vld [vmem:[#allocation12_spill] sm:$0xff] }
 0x155   : > { %1156 = vrot.lane.b32.xlu0 %v4502_v15, %s2430_s17 }
 0x156   : > { %v3478_v47 = vpop.permute.xlu1 %795 }
 0x157   : > { %4503 = vst [vmem:[#allocation9_spill] sm:$0xff] %v3478_v47  ;;  %v3480_v41 = vpop.permute.xlu0 %801 }
 0x158   : > { %4504 = vst [vmem:[#allocation97_spill] sm:$0xff] %v3480_v41  ;;  %1088 = vrot.lane.b32.xlu1 %v2805_v39, %s2429_s7 }
 0x159   : > { %859 = vrot.lane.b32.xlu0 %v4502_v15, %s2427_s5 }
 0x15a   : > { %v3486_v48 = vpop.permute.xlu1 %799 }
 0x15b   : > { %4505 = vst [vmem:[#allocation98_spill] sm:$0xff] %v3486_v48  ;;  %v3488_v59 = vpop.permute.xlu0 %805 }
 0x15c   : > { %4506 = vst [vmem:[#allocation99_spill] sm:$0xff] %v3488_v59  ;;  %1188 = vrot.lane.b32.xlu1 %v4507_v6, %s2430_s17 }
 0x15d   : > { %1158 = vrot.lane.b32.xlu0 %v4508_v38, %s2430_s17 }
 0x15e   : > { %v3494_v34 = vpop.permute.xlu1 %803 }
 0x15f   : > { %4509 = vst [vmem:[#allocation25_spill] sm:$0xff] %v3494_v34  ;;  %v848_v47 = vpop.permute.xlu0 %847 }
 0x160   : > { %891 = vrot.lane.b32.xlu1 %v4507_v6, %s2427_s5 }
 0x161   : > { %1257 = vrot.lane.b32.xlu0 %v2951_v42, %s2431_s29 }
 0x162   : > { %v3500_v39 = vpop.permute.xlu1 %807 }
 0x163   : > { %4510 = vst [vmem:[#allocation12_spill] sm:$0xff] %v3500_v39  ;;  %v880_v15 = vpop.permute.xlu0 %879  ;;  %v4511_v39 = vld [vmem:[#allocation34_spill] sm:$0xff] }
 0x164   : > { %1190 = vrot.lane.b32.xlu1 %v2865_v33, %s2430_s17 }
 0x165   : > { %861 = vrot.lane.b32.xlu0 %v4508_v38, %s2427_s5 }
 0x166   : > { %v3506_v59 = vpop.permute.xlu1 %849 }
 0x167   : > { %v949_v41 = vpop.permute.xlu0 %948 }
 0x168   : > { %1289 = vrot.lane.b32.xlu1 %v3055_v22, %s2431_s29 }
 0x169   : > { %960 = vrot.lane.b32.xlu0 %v2951_v42, %s2428_s6 }
 0x16a   : > { %v3512_v6 = vpop.permute.xlu1 %881 }
 0x16b   : > { %v3514_v34 = vpop.permute.xlu0 %950 }
 0x16c   : > { %893 = vrot.lane.b32.xlu1 %v2865_v33, %s2427_s5 }
 0x16d   : > { %1259 = vrot.lane.b32.xlu0 %v4511_v39, %s2431_s29 }
 0x16e   : > { %v981_v38 = vpop.permute.xlu1 %980 }
 0x16f   : > { %v1047_v48 = vpop.permute.xlu0 %1046 }
 0x170   : > { %992 = vrot.lane.b32.xlu1 %v3055_v22, %s2428_s6 }
 0x171   : > { %962 = vrot.lane.b32.xlu0 %v4511_v39, %s2428_s6 }
 0x172   : > { %v3524_v50 = vpop.permute.xlu1 %982 }
 0x173   : > { %v1049_v42 = vpop.permute.xlu0 %1048 }
 0x174   : > { %1291 = vrot.lane.b32.xlu1 %v3077_v57, %s2431_s29 }
 0x175   : > { %1058 = vrot.lane.b32.xlu0 %v2652_v55, %s2429_s7  ;;  %v1345_v55 = vsel %vm180_vm0, %v2327_v23, %v3072_v51 }
 0x176   : > { %v1079_v33 = vpop.permute.xlu1 %1078 }
 0x177   : > { %v1149_v7 = vpop.permute.xlu0 %1148 }
 0x178   : > { %994 = vrot.lane.b32.xlu1 %v3077_v57, %s2428_s6 }
 0x179   : > { %1060 = vrot.lane.b32.xlu0 %v2654_v56, %s2429_s7  ;;  %v1378_v56 = vsel %vm1377_vm6, %v1345_v55, %v3221_v58 }
 0x17a   : > { %v3534_v22 = vpop.permute.xlu1 %1080  ;;  %v1411_v52 = vsel %vm1410_vm7, %v1378_v56, %v3368_v63  ;;  %v1361_v63 = vsel %vm180_vm0, %v2727_v27, %v3157_v26 }
 0x17b   : > { %v3536_v39 = vpop.permute.xlu0 %851 }
 0x17c   : > { %1090 = vrot.lane.b32.xlu1 %v2822_v3, %s2429_s7  ;;  %v1444_v3 = vsel %vm1443_vm8, %v1411_v52, %v848_v47  ;;  %v4513_v52 = vld [vmem:[#allocation27_spill] sm:$0xff] }
 0x17d   : > { %1160 = vrot.lane.b32.xlu0 %v4512_v54, %s2430_s17  ;;  %v1477_v51 = vsel %vm1476_vm9, %v1444_v3, %v949_v41  ;;  %v1394_v41 = vsel %vm1377_vm6, %v1361_v63, %v3289_v11  ;;  %v2328_v3 = vld [vmem:[#allocation2 + $0x8] sm:$0xff] }
 0x17e   : > { %v1181_v57 = vpop.permute.xlu1 %1180  ;;  %v1510_v58 = vsel %vm1509_vm10, %v1477_v51, %v1047_v48  ;;  %v1427_v47 = vsel %vm1410_vm7, %v1394_v41, %v3432_v43  ;;  %v4514_v48 = vld [vmem:[#allocation14_spill] sm:$0xff]  ;;  %v4515_v51 = vld [vmem:[#allocation45_spill] sm:$0xff] }
 0x17f   : > { %v1151_v13 = vpop.permute.xlu0 %1150  ;;  %v1460_v26 = vsel %vm1443_vm8, %v1427_v47, %v880_v15  ;;  %v1346_v43 = vsel %vm180_vm0, %v2328_v3, %v4515_v51  ;;  %v4516_v63 = vld [vmem:[#allocation33_spill] sm:$0xff] }
 0x180   : > { %1092 = vrot.lane.b32.xlu1 %v2824_v62, %s2429_s7  ;;  %v1543_v62 = vsel %vm1542_vm11, %v1510_v58, %v1149_v7  ;;  %v1493_v7 = vsel %vm1476_vm9, %v1460_v26, %v981_v38  ;;  %v1379_v15 = vsel %vm1377_vm6, %v1346_v43, %v3235_v1 }
 0x181   : > { %863 = vrot.lane.b32.xlu0 %v4512_v54, %s2427_s5  ;;  %v1526_v11 = vsel %vm1509_vm10, %v1493_v7, %v1079_v33  ;;  %v4517_v33 = vld [vmem:[#allocation29_spill] sm:$0xff]  ;;  %v4518_v7 = vld [vmem:[#allocation44_spill] sm:$0xff] }
 0x182   : > { %v3554_v23 = vpop.permute.xlu1 %883  ;;  %v1559_v58 = vsel %vm1542_vm11, %v1526_v11, %v1181_v57  ;;  %v4519_v11 = vld [vmem:[#allocation36_spill] sm:$0xff] }
 0x183   : > { %v1250_v55 = vpop.permute.xlu0 %1249 }
 0x184   : > { %1192 = vrot.lane.b32.xlu1 %v4513_v52, %s2430_s17  ;;  %v1576_v54 = vsel %vm1575_vm12, %v1543_v62, %v1250_v55  ;;  %v1412_v55 = vsel %vm1410_vm7, %v1379_v15, %v3382_v32  ;;  %v1362_v32 = vsel %vm180_vm0, %v2729_v28, %v3171_v61 }
 0x185   : > { %1162 = vrot.lane.b32.xlu0 %v4514_v48, %s2430_s17  ;;  %2217 = vmatprep.mubr.msk.f32.mxu0 %vm1613_vm13, %v1576_v54  ;;  %v1445_v57 = vsel %vm1443_vm8, %v1412_v55, %v3506_v59 }
 0x186   : > { %v1183_v27 = vpop.permute.xlu1 %1182  ;;  %v1478_v41 = vsel %vm1476_vm9, %v1445_v57, %v3514_v34  ;;  %v1395_v34 = vsel %vm1377_vm6, %v1362_v32, %v3309_v35 }
 0x187   : > { %v3573_v56 = vpop.permute.xlu0 %853  ;;  %v1511_v54 = vsel %vm1509_vm10, %v1478_v41, %v1049_v42 }
 0x188   : > { %895 = vrot.lane.b32.xlu1 %v4513_v52, %s2427_s5  ;;  %v1544_v47 = vsel %vm1542_vm11, %v1511_v54, %v1151_v13 }
 0x189   : > { %1261 = vrot.lane.b32.xlu0 %v4516_v63, %s2431_s29 }
 0x18a   : > { %v1282_v62 = vpop.permute.xlu1 %1281 }
 0x18b   : > { %v1592_v38 = vsel %vm1575_vm12, %v1559_v58, %v1282_v62  ;;  %v953_v52 = vpop.permute.xlu0 %952 }
 0x18c   : > { %1194 = vrot.lane.b32.xlu1 %v4517_v33, %s2430_s17  ;;  %2241 = vmatprep.mubr.msk.f32.mxu1 %vm1613_vm13, %v1592_v38  ;;  %v2331_v38 = vld [vmem:[#allocation2 + $0x18] sm:$0xff] }
 0x18d   : > { %865 = vrot.lane.b32.xlu0 %v4514_v48, %s2427_s5  ;;  %v1428_v48 = vsel %vm1410_vm7, %v1395_v34, %v3446_v14  ;;  %v1347_v55 = vsel %vm180_vm0, %v2331_v38, %v3097_v16 }
 0x18e   : > { %v3597_v1 = vpop.permute.xlu1 %885  ;;  %v1461_v61 = vsel %vm1443_vm8, %v1428_v48, %v3512_v6  ;;  %v1380_v57 = vsel %vm1377_vm6, %v1347_v55, %v3229_v30  ;;  %v3671_v30 = vld [vmem:[#allocation2 + $0xd8] sm:$0xff] }
 0x18f   : > { %v1252_v26 = vpop.permute.xlu0 %1251  ;;  %v1494_v13 = vsel %vm1476_vm9, %v1461_v61, %v3524_v50  ;;  %v1413_v41 = vsel %vm1410_vm7, %v1380_v57, %v3376_v2  ;;  %v1363_v2 = vsel %vm180_vm0, %v3671_v30, %v3165_v25 }
 0x190   : > { %1293 = vrot.lane.b32.xlu1 %v4518_v7, %s2431_s29  ;;  %v1577_v59 = vsel %vm1575_vm12, %v1544_v47, %v1252_v26  ;;  %v1527_v35 = vsel %vm1509_vm10, %v1494_v13, %v3534_v22 }
 0x191   : > { %964 = vrot.lane.b32.xlu0 %v4516_v63, %s2428_s6  ;;  %2218 = vmatmul.mubr.msk.f32.vlgmr.msra.gmra.mrb[0].mxu0 %vm1613_vm13, %v1577_v59  ;;  %v1560_v14 = vsel %vm1542_vm11, %v1527_v35, %v1183_v27  ;;  %v3637_v27 = vld [vmem:[#allocation2 + $0x90] sm:$0xff]  ;;  %v3643_v63 = vld [vmem:[#allocation2 + $0x98] sm:$0xff]  ;;  %v4522_v59 = vld [vmem:[#allocation16_spill] sm:$0xff] }
 0x192   : > { %v985_v28 = vpop.permute.xlu1 %984  ;;  %v2333_v35 = vld [vmem:[#allocation2 + $0x20] sm:$0xff] }
 0x193   : > { %v3618_v42 = vpop.permute.xlu0 %954 }
 0x194   : > { %897 = vrot.lane.b32.xlu1 %v4517_v33, %s2427_s5  ;;  %v4520_v33 = vld [vmem:[#allocation13_spill] sm:$0xff] }
 0x195   : > { %1263 = vrot.lane.b32.xlu0 %v4519_v11, %s2431_s29 }
 0x196   : > { %v1284_v3 = vpop.permute.xlu1 %1283 }
 0x197   : > { %v1593_v51 = vsel %vm1575_vm12, %v1560_v14, %v1284_v3  ;;  %v1051_v6 = vpop.permute.xlu0 %1050 }
 0x198   : > { %996 = vrot.lane.b32.xlu1 %v4518_v7, %s2428_s6  ;;  %2242 = vmatmul.mubr.msk.f32.vlgmr.msra.gmra.mrb[0].mxu1 %vm1613_vm13, %v1593_v51 }
 0x199   : > { %966 = vrot.lane.b32.xlu0 %v4519_v11, %s2428_s6  ;;  %v4523_v11 = vld [vmem:[#allocation35_spill] sm:$0xff] }
 0x19a   : > { %v3633_v50 = vpop.permute.xlu1 %986 }
 0x19b   : > { %v1053_v22 = vpop.permute.xlu0 %1052 }
 0x19c   : > { %1295 = vrot.lane.b32.xlu1 %v3092_v53, %s2431_s29 }
 0x19d   : > { %1062 = vrot.lane.b32.xlu0 %v3637_v27, %s2429_s7 }
 0x19e   : > { %v1083_v43 = vpop.permute.xlu1 %1082 }
 0x19f   : > { %v1153_v58 = vpop.permute.xlu0 %1152 }
 0x1a0   : > { %998 = vrot.lane.b32.xlu1 %v3092_v53, %s2428_s6 }
 0x1a1   : > { %1064 = vrot.lane.b32.xlu0 %v3643_v63, %s2429_s7 }
 0x1a2   : > { %v3647_v62 = vpop.permute.xlu1 %1084 }
 0x1a3   : > { %v3649_v15 = vpop.permute.xlu0 %855 }
 0x1a4   : > { %1094 = vrot.lane.b32.xlu1 %v2841_v12, %s2429_s7  ;;  %v1446_v12 = vsel %vm1443_vm8, %v1413_v41, %v3536_v39  ;;  %v4521_v39 = vld [vmem:[#allocation28_spill] sm:$0xff] }
 0x1a5   : > { %1164 = vrot.lane.b32.xlu0 %v4520_v33, %s2430_s17  ;;  %v1479_v32 = vsel %vm1476_vm9, %v1446_v12, %v953_v52  ;;  %v1396_v52 = vsel %vm1377_vm6, %v1363_v2, %v3297_v45  ;;  %v4525_v12 = vld [vmem:[#allocation38_spill] sm:$0xff]  ;;  %v3756_v2 = vld [vmem:[#allocation2 + $0xa8] sm:$0xff] }
 0x1a6   : > { %v1185_v53 = vpop.permute.xlu1 %1184  ;;  %v1512_v47 = vsel %vm1509_vm10, %v1479_v32, %v1051_v6  ;;  %v1429_v34 = vsel %vm1410_vm7, %v1396_v52, %v3440_v21  ;;  %v1348_v21 = vsel %vm180_vm0, %v2333_v35, %v3112_v24  ;;  %v3782_v35 = vld [vmem:[#allocation2 + $0x170] sm:$0xff] }
 0x1a7   : > { %v1155_v54 = vpop.permute.xlu0 %1154  ;;  %v1462_v48 = vsel %vm1443_vm8, %v1429_v34, %v3554_v23  ;;  %v1381_v23 = vsel %vm1377_vm6, %v1348_v21, %v3245_v44  ;;  %v2338_v34 = vld [vmem:[#allocation2 + $0x30] sm:$0xff] }
 0x1a8   : > { %1096 = vrot.lane.b32.xlu1 %v2843_v60, %s2429_s7  ;;  %v1545_v60 = vsel %vm1542_vm11, %v1512_v47, %v1153_v58  ;;  %v1495_v61 = vsel %vm1476_vm9, %v1462_v48, %v985_v28  ;;  %v1414_v51 = vsel %vm1410_vm7, %v1381_v23, %v3390_v5  ;;  %v3717_v5 = vld [vmem:[#allocation2 + $0xe0] sm:$0xff] }
 0x1a9   : > { %867 = vrot.lane.b32.xlu0 %v4520_v33, %s2427_s5  ;;  %v1528_v45 = vsel %vm1509_vm10, %v1495_v61, %v1083_v43  ;;  %v4524_v43 = vld [vmem:[#allocation31_spill] sm:$0xff]  ;;  %v1447_v24 = vsel %vm1443_vm8, %v1414_v51, %v3573_v56  ;;  %v1364_v55 = vsel %vm180_vm0, %v3717_v5, %v3179_v0 }
 0x1aa   : > { %v3668_v16 = vpop.permute.xlu1 %887  ;;  %v1561_v14 = vsel %vm1542_vm11, %v1528_v45, %v1185_v53  ;;  %v1480_v58 = vsel %vm1476_vm9, %v1447_v24, %v3618_v42  ;;  %v1397_v56 = vsel %vm1377_vm6, %v1364_v55, %v3323_v49  ;;  %v2341_v55 = vld [vmem:[#allocation2 + $0x38] sm:$0xff] }
 0x1ab   : > { %v1254_v26 = vpop.permute.xlu0 %1253  ;;  %v1513_v38 = vsel %vm1509_vm10, %v1480_v58, %v1053_v22  ;;  %v1430_v22 = vsel %vm1410_vm7, %v1397_v56, %v3454_v37 }
 0x1ac   : > { %1196 = vrot.lane.b32.xlu1 %v4521_v39, %s2430_s17  ;;  %v1578_v7 = vsel %vm1575_vm12, %v1545_v60, %v1254_v26  ;;  %v1546_v33 = vsel %vm1542_vm11, %v1513_v38, %v1155_v54  ;;  %v1463_v57 = vsel %vm1443_vm8, %v1430_v22, %v3597_v1 }
 0x1ad   : > { %1166 = vrot.lane.b32.xlu0 %v4522_v59, %s2430_s17  ;;  %2220 = vmatprep.mubr.msk.f32.mxu0 %vm1613_vm13, %v1578_v7  ;;  %v1496_v41 = vsel %vm1476_vm9, %v1463_v57, %v3633_v50  ;;  %v3770_v7 = vld [vmem:[#allocation2 + $0x168] sm:$0xff]  ;;  %v4530_v57 = vld [vmem:[#allocation32_spill] sm:$0xff] }
 0x1ae   : > { %v1187_v25 = vpop.permute.xlu1 %1186  ;;  %v1529_v49 = vsel %vm1509_vm10, %v1496_v41, %v3647_v62 }
 0x1af   : > { %v3690_v13 = vpop.permute.xlu0 %857  ;;  %v1562_v37 = vsel %vm1542_vm11, %v1529_v49, %v1187_v25 }
 0x1b0   : > { %899 = vrot.lane.b32.xlu1 %v4521_v39, %s2427_s5 }
 0x1b1   : > { %1265 = vrot.lane.b32.xlu0 %v4523_v11, %s2431_s29 }
 0x1b2   : > { %v1286_v3 = vpop.permute.xlu1 %1285 }
 0x1b3   : > { %v1594_v28 = vsel %vm1575_vm12, %v1561_v14, %v1286_v3  ;;  %v957_v6 = vpop.permute.xlu0 %956 }
 0x1b4   : > { %1198 = vrot.lane.b32.xlu1 %v4524_v43, %s2430_s17  ;;  %2244 = vmatprep.mubr.msk.f32.mxu1 %vm1613_vm13, %v1594_v28  ;;  %v4527_v28 = vld [vmem:[#allocation30_spill] sm:$0xff] }
 0x1b5   : > { %869 = vrot.lane.b32.xlu0 %v4522_v59, %s2427_s5  ;;  %v1349_v59 = vsel %vm180_vm0, %v2338_v34, %v3102_v4 }
 0x1b6   : > { %v3714_v44 = vpop.permute.xlu1 %889  ;;  %v1382_v48 = vsel %vm1377_vm6, %v1349_v59, %v3239_v20 }
 0x1b7   : > { %v1256_v53 = vpop.permute.xlu0 %1255  ;;  %v1415_v61 = vsel %vm1410_vm7, %v1382_v48, %v3384_v36 }
 0x1b8   : > { %1297 = vrot.lane.b32.xlu1 %v3083_v8, %s2431_s29  ;;  %v1579_v42 = vsel %vm1575_vm12, %v1546_v33, %v1256_v53  ;;  %v1448_v21 = vsel %vm1443_vm8, %v1415_v61, %v3649_v15  ;;  %v4529_v53 = vld [vmem:[#allocation37_spill] sm:$0xff]  ;;  %v4534_v61 = vld [vmem:[#allocation48_spill] sm:$0xff] }
 0x1b9   : > { %968 = vrot.lane.b32.xlu0 %v4523_v11, %s2428_s6  ;;  %2221 = vmatmul.mubr.msk.f32.gmra.mrb[2].mxu0 %vm1613_vm13, %v1579_v42  ;;  %v1481_v4 = vsel %vm1476_vm9, %v1448_v21, %v957_v6  ;;  %v2340_v11 = vld [vmem:[#allocation2 + $0xf0] sm:$0xff] }
 0x1ba   : > { %v989_v0 = vpop.permute.xlu1 %988  ;;  %v1365_v36 = vsel %vm180_vm0, %v2340_v11, %v3173_v31 }
 0x1bb   : > { %v3737_v54 = vpop.permute.xlu0 %958  ;;  %v1398_v15 = vsel %vm1377_vm6, %v1365_v36, %v3311_v10 }
 0x1bc   : > { %901 = vrot.lane.b32.xlu1 %v4524_v43, %s2427_s5  ;;  %v1431_v6 = vsel %vm1410_vm7, %v1398_v15, %v3448_v9  ;;  %v4528_v43 = vld [vmem:[#allocation18_spill] sm:$0xff]  ;;  %v1350_v9 = vsel %vm180_vm0, %v2341_v55, %v3123_v46 }
 0x1bd   : > { %1267 = vrot.lane.b32.xlu0 %v4525_v12, %s2431_s29  ;;  %v1464_v24 = vsel %vm1443_vm8, %v1431_v6, %v3668_v16  ;;  %v1383_v16 = vsel %vm1377_vm6, %v1350_v9, %v3255_v17  ;;  %v4537_v6 = vld [vmem:[#allocation47_spill] sm:$0xff]  ;;  %v4540_v55 = vld [vmem:[#allocation86_spill] sm:$0xff] }
 0x1be   : > { %v1288_v32 = vpop.permute.xlu1 %1287  ;;  %v1497_v58 = vsel %vm1476_vm9, %v1464_v24, %v989_v0  ;;  %v1416_v22 = vsel %vm1410_vm7, %v1383_v16, %v3398_v40  ;;  %v2342_v40 = vld [vmem:[#allocation2 + $0xf8] sm:$0xff] }
 0x1bf   : > { %v1595_v47 = vsel %vm1575_vm12, %v1562_v37, %v1288_v32  ;;  %v1055_v1 = vpop.permute.xlu0 %1054  ;;  %v1449_v46 = vsel %vm1443_vm8, %v1416_v22, %v3690_v13  ;;  %v1366_v37 = vsel %vm180_vm0, %v2342_v40, %v3187_v19  ;;  %v3905_v22 = vld [vmem:[#allocation2 + $0x190] sm:$0x3] }
 0x1c0   : > { %1000 = vrot.lane.b32.xlu1 %v3083_v8, %s2428_s6  ;;  %2245 = vmatmul.mubr.msk.f32.gmra.mrb[2].mxu1 %vm1613_vm13, %v1595_v47  ;;  %v3762_v8 = vld [vmem:[#allocation2 + $0xb0] sm:$0xff]  ;;  %v1514_v20 = vsel %vm1509_vm10, %v1481_v4, %v1055_v1  ;;  %v1482_v41 = vsel %vm1476_vm9, %v1449_v46, %v3737_v54  ;;  %v1399_v13 = vsel %vm1377_vm6, %v1366_v37, %v3331_v18  ;;  %v4532_v1 = vld [vmem:[#allocation93_spill] sm:$0xff] }
 0x1c1   : > { %970 = vrot.lane.b32.xlu0 %v4525_v12, %s2428_s6  ;;  %v4531_v47 = vld [vmem:[#allocation46_spill] sm:$0xff]  ;;  %v2346_v46 = vld [vmem:[#allocation2 + $0x108] sm:$0xff] }
 0x1c2   : > { %v3752_v50 = vpop.permute.xlu1 %990  ;;  %v4542_v37 = vld [vmem:[#allocation6_spill] sm:$0xff] }
 0x1c3   : > { %v1057_v62 = vpop.permute.xlu0 %1056 }
 0x1c4   : > { %1299 = vrot.lane.b32.xlu1 %v3107_v29, %s2431_s29  ;;  %v1515_v49 = vsel %vm1509_vm10, %v1482_v41, %v1057_v62  ;;  %v4541_v41 = vld [vmem:[#allocation58_spill] sm:$0xff] }
 0x1c5   : > { %1066 = vrot.lane.b32.xlu0 %v3756_v2, %s2429_s7 }
 0x1c6   : > { %v1087_v60 = vpop.permute.xlu1 %1086 }
 0x1c7   : > { %v1157_v26 = vpop.permute.xlu0 %1156  ;;  %v1530_v10 = vsel %vm1509_vm10, %v1497_v58, %v1087_v60  ;;  %v1432_v60 = vsel %vm1410_vm7, %v1399_v13, %v4532_v1  ;;  %v4539_v58 = vld [vmem:[#allocation69_spill] sm:$0xff] }
 0x1c8   : > { %1002 = vrot.lane.b32.xlu1 %v3107_v29, %s2428_s6  ;;  %v4526_v29 = vld [vmem:[#allocation15_spill] sm:$0xff]  ;;  %v1547_v3 = vsel %vm1542_vm11, %v1514_v20, %v1157_v26  ;;  %v1465_v62 = vsel %vm1443_vm8, %v1432_v60, %v3714_v44  ;;  %v2344_v20 = vld [vmem:[#allocation2 + $0xc8] sm:$0xff] }
 0x1c9   : > { %1068 = vrot.lane.b32.xlu0 %v3762_v8, %s2429_s7  ;;  %v1498_v26 = vsel %vm1476_vm9, %v1465_v62, %v3752_v50 }
 0x1ca   : > { %v3766_v39 = vpop.permute.xlu1 %1088 }
 0x1cb   : > { %v3768_v52 = vpop.permute.xlu0 %859  ;;  %v1531_v18 = vsel %vm1509_vm10, %v1498_v26, %v3766_v39 }
 0x1cc   : > { %1098 = vrot.lane.b32.xlu1 %v3770_v7, %s2429_s7 }
 0x1cd   : > { %1168 = vrot.lane.b32.xlu0 %v4526_v29, %s2430_s17 }
 0x1ce   : > { %v1189_v25 = vpop.permute.xlu1 %1188 }
 0x1cf   : > { %v1159_v45 = vpop.permute.xlu0 %1158  ;;  %v1563_v33 = vsel %vm1542_vm11, %v1530_v10, %v1189_v25 }
 0x1d0   : > { %1100 = vrot.lane.b32.xlu1 %v3782_v35, %s2429_s7  ;;  %v1548_v12 = vsel %vm1542_vm11, %v1515_v49, %v1159_v45  ;;  %v2343_v45 = vld [vmem:[#allocation2 + $0xc0] sm:$0xff]  ;;  %v1367_v49 = vsel %vm180_vm0, %v2346_v46, %v4541_v41 }
 0x1d1   : > { %871 = vrot.lane.b32.xlu0 %v4526_v29, %s2427_s5  ;;  %v4533_v29 = vld [vmem:[#allocation40_spill] sm:$0xff] }
 0x1d2   : > { %v3791_v14 = vpop.permute.xlu1 %891 }
 0x1d3   : > { %v1258_v23 = vpop.permute.xlu0 %1257 }
 0x1d4   : > { %1200 = vrot.lane.b32.xlu1 %v4527_v28, %s2430_s17  ;;  %v1580_v51 = vsel %vm1575_vm12, %v1547_v3, %v1258_v23  ;;  %v4535_v3 = vld [vmem:[#allocation68_spill] sm:$0xff] }
 0x1d5   : > { %1170 = vrot.lane.b32.xlu0 %v4528_v43, %s2430_s17  ;;  %2223 = vmatprep.mubr.msk.f32.mxu0 %vm1613_vm13, %v1580_v51  ;;  %v842_v23 = vrot.slane %v4535_v3, 1  ;;  %v2345_v51 = vld [vmem:[#allocation2 + $0x48] sm:$0xff] }
 0x1d6   : > { %v1191_v31 = vpop.permute.xlu1 %1190 }
 0x1d7   : > { %v3810_v38 = vpop.permute.xlu0 %861  ;;  %v1564_v59 = vsel %vm1542_vm11, %v1531_v18, %v1191_v31  ;;  %v4538_v31 = vld [vmem:[#allocation17_spill] sm:$0xff]  ;;  %v943_v18 = vrot.slane %v4535_v3, 2 }
 0x1d8   : > { %903 = vrot.lane.b32.xlu1 %v4527_v28, %s2427_s5  ;;  %v4536_v28 = vld [vmem:[#allocation70_spill] sm:$0xff] }
 0x1d9   : > { %1269 = vrot.lane.b32.xlu0 %v4529_v53, %s2431_s29  ;;  %v843_v15 = vrot.slane %v4536_v28, 1 }
 0x1da   : > { %v1290_v56 = vpop.permute.xlu1 %1289 }
 0x1db   : > { %v1596_v42 = vsel %vm1575_vm12, %v1563_v33, %v1290_v56  ;;  %v961_v0 = vpop.permute.xlu0 %960  ;;  %v844_v56 = vsel %vm389_vm3, %v842_v23, %v843_v15  ;;  %v4548_v23 = vld [vmem:[#allocation87_spill] sm:$0xff] }
 0x1dc   : > { %1202 = vrot.lane.b32.xlu1 %v4530_v57, %s2430_s17  ;;  %2247 = vmatprep.mubr.msk.f32.mxu1 %vm1613_vm13, %v1596_v42 }
 0x1dd   : > { %873 = vrot.lane.b32.xlu0 %v4528_v43, %s2427_s5  ;;  %v1351_v43 = vsel %vm180_vm0, %v2345_v51, %v4537_v6 }
 0x1de   : > { %v3834_v17 = vpop.permute.xlu1 %893  ;;  %v1384_v10 = vsel %vm1377_vm6, %v1351_v43, %v4539_v58  ;;  %v4549_v58 = vld [vmem:[#allocation60_spill] sm:$0xff] }
 0x1df   : > { %v1260_v32 = vpop.permute.xlu0 %1259  ;;  %v1417_v9 = vsel %vm1410_vm7, %v1384_v10, %v4540_v55 }
 0x1e0   : > { %1301 = vrot.lane.b32.xlu1 %v4531_v47, %s2431_s29  ;;  %v1581_v54 = vsel %vm1575_vm12, %v1548_v12, %v1260_v32  ;;  %v845_v32 = vrot.slane %v3905_v22, 1 }
 0x1e1   : > { %972 = vrot.lane.b32.xlu0 %v4529_v53, %s2428_s6  ;;  %2224 = vmatmul.mubr.msk.f32.gmra.mrb[4].mxu0 %vm1613_vm13, %v1581_v54  ;;  %v1450_v53 = vsel %vm1443_vm8, %v1417_v9, %v3768_v52  ;;  %v4544_v54 = vld [vmem:[#allocation20_spill] sm:$0xff] }
 0x1e2   : > { %v993_v19 = vpop.permute.xlu1 %992  ;;  %v1483_v16 = vsel %vm1476_vm9, %v1450_v53, %v961_v0  ;;  %v1400_v0 = vsel %vm1377_vm6, %v1367_v49, %v4542_v37  ;;  %v4550_v9 = vld [vmem:[#allocation8_spill] sm:$0xff]  ;;  %v946_v49 = vrot.slane %v3905_v22, 2 }
 0x1e3   : > { %v3854_v34 = vpop.permute.xlu0 %962 }
 0x1e4   : > { %905 = vrot.lane.b32.xlu1 %v4530_v57, %s2427_s5 }
 0x1e5   : > { %1271 = vrot.lane.b32.xlu0 %v4533_v29, %s2431_s29 }
 0x1e6   : > { %v1292_v25 = vpop.permute.xlu1 %1291 }
 0x1e7   : > { %v1597_v48 = vsel %vm1575_vm12, %v1564_v59, %v1292_v25  ;;  %v1059_v44 = vpop.permute.xlu0 %1058  ;;  %v944_v59 = vrot.slane %v4536_v28, 2  ;;  %v846_v25 = vsel %vm389_vm3, %v843_v15, %v845_v32 }
 0x1e8   : > { %1004 = vrot.lane.b32.xlu1 %v4531_v47, %s2428_s6  ;;  %2248 = vmatmul.mubr.msk.f32.gmra.mrb[4].mxu1 %vm1613_vm13, %v1597_v48  ;;  %v1516_v57 = vsel %vm1509_vm10, %v1483_v16, %v1059_v44  ;;  %v4543_v47 = vld [vmem:[#allocation92_spill] sm:$0xff]  ;;  %v2347_v48 = vld [vmem:[#allocation2 + $0x50] sm:$0xff] }
 0x1e9   : > { %974 = vrot.lane.b32.xlu0 %v4533_v29, %s2428_s6  ;;  %v1433_v13 = vsel %vm1410_vm7, %v1400_v0, %v4543_v47  ;;  %v4545_v44 = vld [vmem:[#allocation50_spill] sm:$0xff]  ;;  %v945_v51 = vsel %vm566_vm4, %v943_v18, %v944_v59  ;;  %v338_v47 = vld [vmem:[#allocation2 + $0x198] sm:$0xff]  ;;  %v2349_v18 = vld [vmem:[#allocation2 + $0x60] sm:$0xff] }
 0x1ea   : > { %v3869_v50 = vpop.permute.xlu1 %994  ;;  %v1466_v60 = vsel %vm1443_vm8, %v1433_v13, %v3791_v14 }
 0x1eb   : > { %v3871_v39 = vpop.permute.xlu0 %1060  ;;  %v1499_v62 = vsel %vm1476_vm9, %v1466_v60, %v993_v19  ;;  %v4546_v19 = vld [vmem:[#allocation39_spill] sm:$0xff]  ;;  %v1143_v60 = vrot.slane %v338_v47, 1 }
 0x1ec   : > { %1303 = vrot.lane.b32.xlu1 %v4534_v61, %s2431_s29 }
 0x1ed   : > { %1070 = vrot.lane.b32.xlu0 %v2343_v45, %s2429_s7 }
 0x1ee   : > { %v1091_v21 = vpop.permute.xlu1 %1090 }
 0x1ef   : > { %v1161_v4 = vpop.permute.xlu0 %1160  ;;  %v1532_v29 = vsel %vm1509_vm10, %v1499_v62, %v1091_v21 }
 0x1f0   : > { %1006 = vrot.lane.b32.xlu1 %v4534_v61, %s2428_s6  ;;  %v1549_v40 = vsel %vm1542_vm11, %v1516_v57, %v1161_v4  ;;  %v1352_v61 = vsel %vm180_vm0, %v2347_v48, %v4545_v44  ;;  %v4547_v4 = vld [vmem:[#allocation72_spill] sm:$0xff]  ;;  %v340_v48 = vld [vmem:[#allocation2 + $0x1a8] sm:$0x3]  ;;  %v4555_v44 = vld [vmem:[#allocation71_spill] sm:$0xff] }
 0x1f1   : > { %1072 = vrot.lane.b32.xlu0 %v2344_v20, %s2429_s7  ;;  %v1385_v20 = vsel %vm1377_vm6, %v1352_v61, %v4547_v4  ;;  %v4556_v61 = vld [vmem:[#allocation7_spill] sm:$0xff] }
 0x1f2   : > { %v3879_v11 = vpop.permute.xlu1 %1092  ;;  %v1418_v21 = vsel %vm1410_vm7, %v1385_v20, %v4548_v23  ;;  %v1146_v20 = vrot.slane %v340_v48, 1  ;;  %v4557_v23 = vld [vmem:[#allocation22_spill] sm:$0xff] }
 0x1f3   : > { %v3881_v36 = vpop.permute.xlu0 %863  ;;  %v1451_v15 = vsel %vm1443_vm8, %v1418_v21, %v3810_v38 }
 0x1f4   : > { %1102 = vrot.lane.b32.xlu1 %v4535_v3, %s2429_s7  ;;  %v1484_v6 = vsel %vm1476_vm9, %v1451_v15, %v3854_v34  ;;  %v2350_v15 = vld [vmem:[#allocation2 + $0x120] sm:$0xff] }
 0x1f5   : > { %1172 = vrot.lane.b32.xlu0 %v4538_v31, %s2430_s17 }
 0x1f6   : > { %v1193_v24 = vpop.permute.xlu1 %1192 }
 0x1f7   : > { %v1163_v33 = vpop.permute.xlu0 %1162  ;;  %v1565_v14 = vsel %vm1542_vm11, %v1532_v29, %v1193_v24  ;;  %v2348_v24 = vld [vmem:[#allocation2 + $0x110] sm:$0xff]  ;;  %v4554_v29 = vld [vmem:[#allocation19_spill] sm:$0xff] }
 0x1f8   : > { %1104 = vrot.lane.b32.xlu1 %v4536_v28, %s2429_s7  ;;  %v1368_v10 = vsel %vm180_vm0, %v2348_v24, %v4549_v58  ;;  %v4559_v24 = vld [vmem:[#allocation21_spill] sm:$0xff] }
 0x1f9   : > { %875 = vrot.lane.b32.xlu0 %v4538_v31, %s2427_s5  ;;  %v1517_v31 = vsel %vm1509_vm10, %v1484_v6, %v3871_v39  ;;  %v1401_v34 = vsel %vm1377_vm6, %v1368_v10, %v4550_v9 }
 0x1fa   : > { %v3903_v42 = vpop.permute.xlu1 %895  ;;  %v1550_v55 = vsel %vm1542_vm11, %v1517_v31, %v1163_v33 }
 0x1fb   : > { %v1262_v52 = vpop.permute.xlu0 %1261 }
 0x1fc   : > { %1204 = vrot.lane.b32.xlu1 %v844_v56, %s2430_s17  ;;  %v1582_v12 = vsel %vm1575_vm12, %v1549_v40, %v1262_v52  ;;  %v4552_v52 = vld [vmem:[#allocation42_spill] sm:$0xff] }
 0x1fd   : > { %1174 = vrot.lane.b32.xlu0 %v4544_v54, %s2430_s17  ;;  %2226 = vmatprep.mubr.msk.f32.mxu0 %vm1613_vm13, %v1582_v12 }
 0x1fe   : > { %v1195_v1 = vpop.permute.xlu1 %1194 }
 0x1ff   : > { %v3924_v26 = vpop.permute.xlu0 %865 }
 0x200   : > { %907 = vrot.lane.b32.xlu1 %v844_v56, %s2427_s5  ;;  %v4551_v56 = vld [vmem:[#allocation95_spill] sm:$0xff] }
 0x201   : > { %1273 = vrot.lane.b32.xlu0 %v4546_v19, %s2431_s29  ;;  %v1434_v16 = vsel %vm1410_vm7, %v1401_v34, %v4551_v56  ;;  %v4560_v34 = vld [vmem:[#allocation94_spill] sm:$0xff]  ;;  %v4561_v56 = vld [vmem:[#allocation41_spill] sm:$0xff] }
 0x202   : > { %v1294_v45 = vpop.permute.xlu1 %1293  ;;  %v1467_v33 = vsel %vm1443_vm8, %v1434_v16, %v3834_v17 }
 0x203   : > { %v1598_v3 = vsel %vm1575_vm12, %v1565_v14, %v1294_v45  ;;  %v3941_v28 = vpop.permute.xlu0 %964  ;;  %v1500_v57 = vsel %vm1476_vm9, %v1467_v33, %v3869_v50  ;;  %v947_v50 = vsel %vm566_vm4, %v944_v59, %v946_v49  ;;  %v4553_v59 = vld [vmem:[#allocation49_spill] sm:$0xff] }
 0x204   : > { %1206 = vrot.lane.b32.xlu1 %v846_v25, %s2430_s17  ;;  %2250 = vmatprep.mubr.msk.f32.mxu1 %vm1613_vm13, %v1598_v3  ;;  %v1533_v41 = vsel %vm1509_vm10, %v1500_v57, %v3879_v11 }
 0x205   : > { %877 = vrot.lane.b32.xlu0 %v4544_v54, %s2427_s5  ;;  %v1566_v40 = vsel %vm1542_vm11, %v1533_v41, %v1195_v1  ;;  %v339_v54 = vld [vmem:[#allocation2 + $0x1a0] sm:$0xff] }
 0x206   : > { %v3952_v43 = vpop.permute.xlu1 %897  ;;  %v1144_v62 = vrot.slane %v339_v54, 1 }
 0x207   : > { %v1264_v38 = vpop.permute.xlu0 %1263 }
 0x208   : > { %1305 = vrot.lane.b32.xlu1 %v945_v51, %s2431_s29  ;;  %v1583_v53 = vsel %vm1575_vm12, %v1550_v55, %v1264_v38  ;;  %v1145_v4 = vsel %vm389_vm3, %v1143_v60, %v1144_v62  ;;  %v1245_v55 = vrot.slane %v339_v54, 2  ;;  %v1147_v9 = vsel %vm389_vm3, %v1144_v62, %v1146_v20  ;;  %v4565_v60 = vld [vmem:[#allocation23_spill] sm:$0xff] }
 0x209   : > { %976 = vrot.lane.b32.xlu0 %v4546_v19, %s2428_s6  ;;  %2227 = vmatmul.mubr.msk.f32.gmra.mrb[6].mxu0 %vm1613_vm13, %v1583_v53 }
 0x20a   : > { %v3968_v39 = vpop.permute.xlu1 %996 }
 0x20b   : > { %v3974_v46 = vpop.permute.xlu0 %966 }
 0x20c   : > { %909 = vrot.lane.b32.xlu1 %v846_v25, %s2427_s5  ;;  %s164_s5 = scalar_lea.vmem [#allocation3], %s2126_s4 }
 0x20d   : > { %1275 = vrot.lane.b32.xlu0 %v4552_v52, %s2431_s29 }
 0x20e   : > { %v1296_v37 = vpop.permute.xlu1 %1295 }
 0x20f   : > { %v1599_v17 = vsel %vm1575_vm12, %v1566_v40, %v1296_v37  ;;  %v1063_v0 = vpop.permute.xlu0 %1062  ;;  %v2351_v37 = vld [vmem:[#allocation2 + $0x68] sm:$0xff] }
 0x210   : > { %1008 = vrot.lane.b32.xlu1 %v945_v51, %s2428_s6  ;;  %2251 = vmatmul.mubr.msk.f32.gmra.mrb[6].mxu1 %vm1613_vm13, %v1599_v17  ;;  %v4558_v51 = vld [vmem:[#allocation59_spill] sm:$0xff]  ;;  %v4562_v17 = vld [vmem:[#allocation52_spill] sm:$0xff] }
 0x211   : > { %978 = vrot.lane.b32.xlu0 %v4552_v52, %s2428_s6  ;;  %v1369_v6 = vsel %vm180_vm0, %v2350_v15, %v4558_v51  ;;  %v1247_v52 = vrot.slane %v340_v48, 2  ;;  %v2352_v48 = vld [vmem:[#allocation2 + $0x128] sm:$0xff] }
 0x212   : > { %v3989_v11 = vpop.permute.xlu1 %998 }
 0x213   : > { %v3991_v22 = vpop.permute.xlu0 %1064 }
 0x214   : > { %1307 = vrot.lane.b32.xlu1 %v947_v50, %s2431_s29 }
 0x215   : > { %1074 = vrot.lane.b32.xlu0 %v3671_v30, %s2429_s7  ;;  %v1353_v30 = vsel %vm180_vm0, %v2349_v18, %v4553_v59  ;;  %v1248_v59 = vsel %vm566_vm4, %v1245_v55, %v1247_v52 }
 0x216   : > { %v1095_v12 = vpop.permute.xlu1 %1094 }
 0x217   : > { %v1165_v32 = vpop.permute.xlu0 %1164 }
 0x218   : > { %1010 = vrot.lane.b32.xlu1 %v947_v50, %s2428_s6  ;;  %s2169_s6 = sshll.u32 %s2474_s16, 8 }
 0x219   : > { %1076 = vrot.lane.b32.xlu0 %v3717_v5, %s2429_s7  ;;  %v1386_v5 = vsel %vm1377_vm6, %v1353_v30, %v4555_v44  ;;  %v4566_v44 = vld [vmem:[#allocation62_spill] sm:$0xff]  ;;  %s4265_s10 = scalar_lea.hbm %s4307_s2, %s2169_s6 }
 0x21a   : > { %v3999_v13 = vpop.permute.xlu1 %1096  ;;  %v1419_v14 = vsel %vm1410_vm7, %v1386_v5, %v4556_v61  ;;  %v1370_v5 = vsel %vm180_vm0, %v2352_v48, %v4566_v44 }
 0x21b   : > { %v4001_v1 = vpop.permute.xlu0 %867  ;;  %v1452_v45 = vsel %vm1443_vm8, %v1419_v14, %v3881_v36  ;;  %v1402_v36 = vsel %vm1377_vm6, %v1369_v6, %v4559_v24 }
 0x21c   : > { %1106 = vrot.lane.b32.xlu1 %v338_v47, %s2429_s7  ;;  %v1485_v3 = vsel %vm1476_vm9, %v1452_v45, %v3941_v28  ;;  %v1244_v28 = vrot.slane %v338_v47, 2  ;;  %v1435_v53 = vsel %vm1410_vm7, %v1402_v36, %v4560_v34  ;;  %v4570_v34 = vld [vmem:[#allocation73_spill] sm:$0xff] }
 0x21d   : > { %1176 = vrot.lane.b32.xlu0 %v4554_v29, %s2430_s17  ;;  %v1518_v31 = vsel %vm1509_vm10, %v1485_v3, %v1063_v0  ;;  %v1468_v33 = vsel %vm1443_vm8, %v1435_v53, %v3903_v42  ;;  %v1354_v0 = vsel %vm180_vm0, %v2351_v37, %v4562_v17  ;;  %v4563_v42 = vld [vmem:[#allocation43_spill] sm:$0xff]  ;;  %v4572_v17 = vld [vmem:[#allocation61_spill] sm:$0xff] }
 0x21e   : > { %v1197_v25 = vpop.permute.xlu1 %1196  ;;  %v1551_v58 = vsel %vm1542_vm11, %v1518_v31, %v1165_v32  ;;  %v1501_v57 = vsel %vm1476_vm9, %v1468_v33, %v3968_v39  ;;  %v1246_v40 = vsel %vm566_vm4, %v1244_v28, %v1245_v55  ;;  %v4564_v39 = vld [vmem:[#allocation74_spill] sm:$0xff]  ;;  %v2354_v37 = vld [vmem:[#allocation2 + $0x138] sm:$0xff] }
 0x21f   : > { %v1167_v19 = vpop.permute.xlu0 %1166  ;;  %v1534_v49 = vsel %vm1509_vm10, %v1501_v57, %v1095_v12  ;;  %v1387_v47 = vsel %vm1377_vm6, %v1354_v0, %v4564_v39  ;;  %v1371_v0 = vsel %vm180_vm0, %v2354_v37, %v4572_v17 }
 0x220   : > { %1108 = vrot.lane.b32.xlu1 %v339_v54, %s2429_s7  ;;  %v1567_v50 = vsel %vm1542_vm11, %v1534_v49, %v1197_v25  ;;  %v1420_v12 = vsel %vm1410_vm7, %v1387_v47, %v4565_v60  ;;  %s2036_s7 = sshll.u32 %s164_s5, 4  ;;  %s2037_s7 = int_to_ptr.vmem [resolvable:$true] %s2036_s7 }
 0x221   : > { %1178 = vrot.lane.b32.xlu0 %v4557_v23, %s2430_s17  ;;  %v1453_v18 = vsel %vm1443_vm8, %v1420_v12, %v3924_v26  ;;  %v4567_v26 = vld [vmem:[#allocation24_spill] sm:$0xff]  ;;  %p2366_p0 = scmp.lt.s32.totalorder %s2037_s7, %s2364_s20 }
 0x222   : > { %v4020_v21 = vpop.permute.xlu1 %899  ;;  %v1486_v30 = vsel %vm1476_vm9, %v1453_v18, %v3974_v46  ;;  %v1403_v45 = vsel %vm1377_vm6, %v1370_v5, %v4567_v26  ;;  %v4568_v46 = vld [vmem:[#allocation9_spill] sm:$0xff] }
 0x223   : > { %v1266_v10 = vpop.permute.xlu0 %1265  ;;  %v1519_v25 = vsel %vm1509_vm10, %v1486_v30, %v3991_v22  ;;  %v1436_v20 = vsel %vm1410_vm7, %v1403_v45, %v4568_v46  ;;  %v2355_v30 = vld [vmem:[#allocation2 + $0x80] sm:$0xff]  ;;  %v4577_v45 = vld [vmem:[#allocation89_spill] sm:$0xff] }
 0x224   : > { %1208 = vrot.lane.b32.xlu1 %v1145_v4, %s2430_s17  ;;  %v1584_v38 = vsel %vm1575_vm12, %v1551_v58, %v1266_v10  ;;  %v1552_v61 = vsel %vm1542_vm11, %v1519_v25, %v1167_v19  ;;  %v1469_v3 = vsel %vm1443_vm8, %v1436_v20, %v3952_v43  ;;  %v4575_v25 = vld [vmem:[#allocation54_spill] sm:$0xff] }
 0x225   : > { %1277 = vrot.lane.b32.xlu0 %v4561_v56, %s2431_s29  ;;  %2229 = vmatprep.mubr.msk.f32.mxu0 %vm1613_vm13, %v1584_v38  ;;  %v1502_v19 = vsel %vm1476_vm9, %v1469_v3, %v3989_v11  ;;  %v2353_v11 = vld [vmem:[#allocation2 + $0x78] sm:$0xff]  ;;  %v4571_v56 = vld [vmem:[#allocation88_spill] sm:$0xff]  ;;  %v1356_v48 = vsel %vm180_vm0, %v2355_v30, %v4575_v25  ;;  %v2357_v25 = vld [vmem:[#allocation2 + $0x150] sm:$0xff] }
 0x226   : > { %v1199_v16 = vpop.permute.xlu1 %1198  ;;  %v1535_v15 = vsel %vm1509_vm10, %v1502_v19, %v3999_v13  ;;  %v4569_v38 = vld [vmem:[#allocation51_spill] sm:$0xff]  ;;  %v2356_v19 = vld [vmem:[#allocation2 + $0x140] sm:$0xff] }
 0x227   : > { %v4040_v41 = vpop.permute.xlu0 %869  ;;  %v1568_v51 = vsel %vm1542_vm11, %v1535_v15, %v1199_v16  ;;  %v4578_v15 = vld [vmem:[#allocation64_spill] sm:$0xff] }
 0x228   : > { %1210 = vrot.lane.b32.xlu1 %v1147_v9, %s2430_s17  ;;  %v1355_v9 = vsel %vm180_vm0, %v2353_v11, %v4569_v38  ;;  %v4580_v11 = vld [vmem:[#allocation98_spill] sm:$0xff]  ;;  %s2359_s17 = scalar_lea.vmem %s2037_s7, 256 }
 0x229   : > { %1279 = vrot.lane.b32.xlu0 %v4563_v42, %s2431_s29  ;;  %v1388_v53 = vsel %vm1377_vm6, %v1355_v9, %v4570_v34  ;;  %p2360_p11 = scmp.ne.s32.totalorder %s2037_s7, %s2359_s17  ;;  %p2367_p1 = scmp.lt.s32.totalorder %s2365_s25, %s2359_s17 }
 0x22a   : > { %v1298_v32 = vpop.permute.xlu1 %1297  ;;  %v1421_v16 = vsel %vm1410_vm7, %v1388_v53, %v4571_v56 }
 0x22b   : > { %v1600_v54 = vsel %vm1575_vm12, %v1567_v50, %v1298_v32  ;;  %v969_v62 = vpop.permute.xlu0 %968  ;;  %v1454_v57 = vsel %vm1443_vm8, %v1421_v16, %v4001_v1  ;;  %v4573_v32 = vld [vmem:[#allocation80_spill] sm:$0xff]  ;;  %p2361_p12 = pnand %p2360_p11, %p2491_p5  ;;  %p2368_p2 = por %p2367_p1, %p2366_p0 }
 0x22c   : > { %1309 = vrot.lane.b32.xlu1 %v1246_v40, %s2431_s29  ;;  %2253 = vmatprep.mubr.msk.f32.mxu1 %vm1613_vm13, %v1600_v54  ;;  %v1487_v49 = vsel %vm1476_vm9, %v1454_v57, %v969_v62  ;;  %v1404_v39 = vsel %vm1377_vm6, %v1371_v0, %v4573_v32  ;;  %v4574_v54 = vld [vmem:[#allocation96_spill] sm:$0xff] }
 0x22d   : > { %v1437_v1 = vsel %vm1410_vm7, %v1404_v39, %v4574_v54  ;;  %v4582_v39 = vld [vmem:[#allocation75_spill] sm:$0xff]  ;;  %v4583_v54 = vld [vmem:[#allocation10_spill] sm:$0xff]  ;;  %p2362_p13 = pneg %p2361_p12 }
 0x22e   : > { %v4062_v29 = vpop.permute.xlu1 %901  ;;  %v1470_v12 = vsel %vm1443_vm8, %v1437_v1, %v4020_v21 }
 0x22f   : > { %v1268_v14 = vpop.permute.xlu0 %1267  ;;  %p2369_p3 = pnand %p2368_p2, %p2362_p13 }
 0x230   : > { %1311 = vrot.lane.b32.xlu1 %v1248_v59, %s2431_s29  ;;  %v1585_v4 = vsel %vm1575_vm12, %v1552_v61, %v1268_v14  ;;  %v4576_v61 = vld [vmem:[#allocation76_spill] sm:$0xff] }
 0x231   : > { %2230 = vmatmul.mubr.msk.f32.gmra.mrb[8].mxu0 %vm1613_vm13, %v1585_v4  ;;  %v1389_v14 = vsel %vm1377_vm6, %v1356_v48, %v4576_v61  ;;  %v4585_v61 = vld [vmem:[#allocation81_spill] sm:$0xff] }
 0x232   : > { %v1001_v22 = vpop.permute.xlu1 %1000  ;;  %v1422_v21 = vsel %vm1410_vm7, %v1389_v14, %v4577_v45 }
 0x233   : > { %v971_v23 = vpop.permute.xlu0 %970  ;;  %v1503_v62 = vsel %vm1476_vm9, %v1470_v12, %v1001_v22  ;;  %v1455_v46 = vsel %vm1443_vm8, %v1422_v21, %v4040_v41 }
 0x234   : > { %v1488_v20 = vsel %vm1476_vm9, %v1455_v46, %v971_v23 }
 0x236   : > { %v1300_v6 = vpop.permute.xlu1 %1299 }
 0x237   : > { %v1601_v31 = vsel %vm1575_vm12, %v1568_v51, %v1300_v6  ;;  %v1067_v24 = vpop.permute.xlu0 %1066  ;;  %v1372_v51 = vsel %vm180_vm0, %v2356_v19, %v4578_v15  ;;  %v4587_v19 = vld [vmem:[#allocation56_spill] sm:$0xff] }
 0x238   : > { %2254 = vmatmul.mubr.msk.f32.gmra.mrb[8].mxu1 %vm1613_vm13, %v1601_v31  ;;  %v1520_v52 = vsel %vm1509_vm10, %v1487_v49, %v1067_v24  ;;  %v4579_v24 = vld [vmem:[#allocation82_spill] sm:$0xff]  ;;  %v1358_v15 = vsel %vm180_vm0, %v3643_v63, %v4587_v19 }
 0x23a   : > { %v1003_v36 = vpop.permute.xlu1 %1002 }
 0x23b   : > { %v1069_v58 = vpop.permute.xlu0 %1068 }
 0x23c   : > { %v1521_v3 = vsel %vm1509_vm10, %v1488_v20, %v1069_v58 }
 0x23e   : > { %v1099_v10 = vpop.permute.xlu1 %1098 }
 0x23f   : > { %v1169_v28 = vpop.permute.xlu0 %1168  ;;  %v1536_v59 = vsel %vm1509_vm10, %v1503_v62, %v1099_v10  ;;  %v1405_v10 = vsel %vm1377_vm6, %v1372_v51, %v4579_v24 }
 0x240   : > { %v1553_v50 = vsel %vm1542_vm11, %v1520_v52, %v1169_v28  ;;  %v1438_v41 = vsel %vm1410_vm7, %v1405_v10, %v4580_v11 }
 0x241   : > { %v1471_v58 = vsel %vm1443_vm8, %v1438_v41, %v4062_v29 }
 0x242   : > { %v1101_v43 = vpop.permute.xlu1 %1100  ;;  %v1504_v38 = vsel %vm1476_vm9, %v1471_v58, %v1003_v36 }
 0x243   : > { %v4085_v55 = vpop.permute.xlu0 %871 }
 0x246   : > { %v1201_v13 = vpop.permute.xlu1 %1200 }
 0x247   : > { %v1171_v33 = vpop.permute.xlu0 %1170  ;;  %v1569_v44 = vsel %vm1542_vm11, %v1536_v59, %v1201_v13  ;;  %v1537_v13 = vsel %vm1509_vm10, %v1504_v38, %v1101_v43  ;;  %v2358_v38 = vld [vmem:[#allocation2 + $0x158] sm:$0xff] }
 0x248   : > { %v1554_v6 = vsel %vm1542_vm11, %v1521_v3, %v1171_v33 }
 0x24a   : > { %v4096_v40 = vpop.permute.xlu1 %903 }
 0x24b   : > { %v1270_v42 = vpop.permute.xlu0 %1269 }
 0x24c   : > { %v1586_v47 = vsel %vm1575_vm12, %v1553_v50, %v1270_v42  ;;  %v4581_v50 = vld [vmem:[#allocation53_spill] sm:$0xff] }
 0x24d   : > { %2232 = vmatprep.mubr.msk.f32.mxu0 %vm1613_vm13, %v1586_v47  ;;  %v1357_v42 = vsel %vm180_vm0, %v3637_v27, %v4581_v50  ;;  %v4584_v27 = vld [vmem:[#allocation63_spill] sm:$0xff] }
 0x24e   : > { %v1203_v60 = vpop.permute.xlu1 %1202  ;;  %v1390_v47 = vsel %vm1377_vm6, %v1357_v42, %v4582_v39  ;;  %v1373_v48 = vsel %vm180_vm0, %v2357_v25, %v4584_v27 }
 0x24f   : > { %v4111_v18 = vpop.permute.xlu0 %873  ;;  %v1570_v34 = vsel %vm1542_vm11, %v1537_v13, %v1203_v60  ;;  %v1423_v1 = vsel %vm1410_vm7, %v1390_v47, %v4583_v54  ;;  %v1406_v14 = vsel %vm1377_vm6, %v1373_v48, %v4585_v61  ;;  %v4590_v13 = vld [vmem:[#allocation66_spill] sm:$0xff] }
 0x250   : > { %v1456_v12 = vsel %vm1443_vm8, %v1423_v1, %v4085_v55  ;;  %v4586_v55 = vld [vmem:[#allocation97_spill] sm:$0xff]  ;;  %v4595_v48 = vld [vmem:[#allocation90_spill] sm:$0xff] }
 0x251   : > { %v1439_v45 = vsel %vm1410_vm7, %v1406_v14, %v4586_v55 }
 0x252   : > { %v1302_v5 = vpop.permute.xlu1 %1301 }
 0x253   : > { %v1602_v26 = vsel %vm1575_vm12, %v1569_v44, %v1302_v5  ;;  %v973_v4 = vpop.permute.xlu0 %972 }
 0x254   : > { %2256 = vmatprep.mubr.msk.f32.mxu1 %vm1613_vm13, %v1602_v26  ;;  %v1489_v62 = vsel %vm1476_vm9, %v1456_v12, %v973_v4  ;;  %v1472_v4 = vsel %vm1443_vm8, %v1439_v45, %v4096_v40 }
 0x256   : > { %v4126_v22 = vpop.permute.xlu1 %905 }
 0x257   : > { %v1272_v31 = vpop.permute.xlu0 %1271 }
 0x258   : > { %v1587_v28 = vsel %vm1575_vm12, %v1554_v6, %v1272_v31  ;;  %v4588_v31 = vld [vmem:[#allocation78_spill] sm:$0xff] }
 0x259   : > { %2233 = vmatmul.mubr.msk.f32.gmra.mrb[10].mxu0 %vm1613_vm13, %v1587_v28  ;;  %v1391_v24 = vsel %vm1377_vm6, %v1358_v15, %v4588_v31  ;;  %v4589_v28 = vld [vmem:[#allocation26_spill] sm:$0xff]  ;;  %v4599_v15 = vld [vmem:[#allocation91_spill] sm:$0xff] }
 0x25a   : > { %v1005_v23 = vpop.permute.xlu1 %1004  ;;  %v1424_v40 = vsel %vm1410_vm7, %v1391_v24, %v4589_v28  ;;  %v4600_v31 = vld [vmem:[#allocation83_spill] sm:$0xff] }
 0x25b   : > { %v975_v9 = vpop.permute.xlu0 %974  ;;  %v1505_v46 = vsel %vm1476_vm9, %v1472_v4, %v1005_v23  ;;  %v1457_v41 = vsel %vm1443_vm8, %v1424_v40, %v4111_v18  ;;  %v4601_v28 = vld [vmem:[#allocation99_spill] sm:$0xff] }
 0x25c   : > { %v1490_v23 = vsel %vm1476_vm9, %v1457_v41, %v975_v9 }
 0x25e   : > { %v1304_v53 = vpop.permute.xlu1 %1303 }
 0x25f   : > { %v1603_v56 = vsel %vm1575_vm12, %v1570_v34, %v1304_v53  ;;  %v1071_v16 = vpop.permute.xlu0 %1070  ;;  %v1374_v34 = vsel %vm180_vm0, %v2358_v38, %v4590_v13 }
 0x260   : > { %2257 = vmatmul.mubr.msk.f32.gmra.mrb[10].mxu1 %vm1613_vm13, %v1603_v56  ;;  %v1522_v30 = vsel %vm1509_vm10, %v1489_v62, %v1071_v16  ;;  %v4591_v16 = vld [vmem:[#allocation84_spill] sm:$0xff]  ;;  %v4593_v62 = vld [vmem:[#allocation55_spill] sm:$0xff] }
 0x262   : > { %v1007_v33 = vpop.permute.xlu1 %1006 }
 0x263   : > { %v1073_v57 = vpop.permute.xlu0 %1072 }
 0x264   : > { %v2219_v49 = vpop.f32.mrb[0].mxu0  ;;  %v1523_v58 = vsel %vm1509_vm10, %v1490_v23, %v1073_v57 }
 0x265   : > { %v1780_v52 = vpop.f32.mrb[1].mxu0 }
 0x266   : > { %v1103_v37 = vpop.permute.xlu1 %1102  ;;  %1939 = vxpose.xlu0.b32.start [1/16] (narrow) %v1780_v52, 8 }
 0x267   : > { %v1173_v29 = vpop.permute.xlu0 %1172  ;;  %v1538_v3 = vsel %vm1509_vm10, %v1505_v46, %v1103_v37  ;;  %v4592_v37 = vld [vmem:[#allocation25_spill] sm:$0xff] }
 0x268   : > { %v1555_v44 = vsel %vm1542_vm11, %v1522_v30, %v1173_v29  ;;  %v4594_v30 = vld [vmem:[#allocation77_spill] sm:$0xff] }
 0x26a   : > { %v1105_v17 = vpop.permute.xlu1 %1104  ;;  %1940 = vxpose.xlu0.b32.cont [2/16] (narrow) %v2219_v49, 8  ;;  %v1407_v49 = vsel %vm1377_vm6, %v1374_v34, %v4591_v16 }
 0x26b   : > { %v2243_v36 = vpop.f32.mrb[0].mxu1  ;;  %v4145_v0 = vpop.permute.xlu0 %875  ;;  %v1440_v18 = vsel %vm1410_vm7, %v1407_v49, %v4592_v37 }
 0x26c   : > { %v1860_v43 = vpop.f32.mrb[1].mxu1  ;;  %v1473_v57 = vsel %vm1443_vm8, %v1440_v18, %v4126_v22 }
 0x26d   : > { %1971 = vxpose.xlu1.b32.start [1/16] (narrow) %v1860_v43, 8  ;;  %v1506_v29 = vsel %vm1476_vm9, %v1473_v57, %v1007_v33  ;;  %v1359_v33 = vsel %vm180_vm0, %v3756_v2, %v4593_v62 }
 0x26e   : > { %v1205_v32 = vpop.permute.xlu1 %1204  ;;  %v1539_v43 = vsel %vm1509_vm10, %v1506_v29, %v1105_v17  ;;  %v1392_v25 = vsel %vm1377_vm6, %v1359_v33, %v4594_v30 }
 0x26f   : > { %v1175_v60 = vpop.permute.xlu0 %1174  ;;  %v1571_v51 = vsel %vm1542_vm11, %v1538_v3, %v1205_v32  ;;  %v4598_v3 = vld [vmem:[#allocation65_spill] sm:$0xff] }
 0x270   : > { %v1556_v53 = vsel %vm1542_vm11, %v1523_v58, %v1175_v60  ;;  %v1375_v19 = vsel %vm180_vm0, %v3770_v7, %v4598_v3  ;;  %v4602_v58 = vld [vmem:[#allocation67_spill] sm:$0xff] }
 0x271   : > { %1972 = vxpose.xlu1.b32.cont [2/16] (narrow) %v2243_v36, 8 }
 0x272   : > { %v4157_v59 = vpop.permute.xlu1 %907 }
 0x273   : > { %v1274_v5 = vpop.permute.xlu0 %1273 }
 0x274   : > { %v1588_v26 = vsel %vm1575_vm12, %v1555_v44, %v1274_v5  ;;  %v1425_v44 = vsel %vm1410_vm7, %v1392_v25, %v4595_v48 }
 0x275   : > { %2235 = vmatprep.mubr.msk.f32.mxu0 %vm1613_vm13, %v1588_v26  ;;  %v1458_v14 = vsel %vm1443_vm8, %v1425_v44, %v4145_v0  ;;  %v4596_v26 = vld [vmem:[#allocation57_spill] sm:$0xff] }
 0x276   : > { %v1207_v21 = vpop.permute.xlu1 %1206  ;;  %v1360_v55 = vsel %vm180_vm0, %v3762_v8, %v4596_v26  ;;  %v1408_v8 = vsel %vm1377_vm6, %v1375_v19, %v4600_v31 }
 0x277   : > { %v878_v20 = vpop.permute.xlu0 %877  ;;  %v1572_v50 = vsel %vm1542_vm11, %v1539_v43, %v1207_v21  ;;  %v4597_v21 = vld [vmem:[#allocation79_spill] sm:$0xff]  ;;  %v1441_v40 = vsel %vm1410_vm7, %v1408_v8, %v4601_v28 }
 0x278   : > { %v1393_v4 = vsel %vm1377_vm6, %v1360_v55, %v4597_v21  ;;  %v1474_v41 = vsel %vm1443_vm8, %v1441_v40, %v4157_v59 }
 0x279   : > { %v1426_v0 = vsel %vm1410_vm7, %v1393_v4, %v4599_v15 }
 0x27a   : > { %v1306_v6 = vpop.permute.xlu1 %1305  ;;  %v1459_v24 = vsel %vm1443_vm8, %v1426_v0, %v878_v20  ;;  %v1376_v20 = vsel %vm180_vm0, %v3782_v35, %v4602_v58 }
 0x27b   : > { %v1604_v10 = vsel %vm1575_vm12, %v1571_v51, %v1306_v6  ;;  %v977_v11 = vpop.permute.xlu0 %976 }
 0x27c   : > { %2259 = vmatprep.mubr.msk.f32.mxu1 %vm1613_vm13, %v1604_v10  ;;  %v1491_v2 = vsel %vm1476_vm9, %v1458_v14, %v977_v11 }
 0x27e   : > { %v4186_v63 = vpop.permute.xlu1 %909 }
 0x27f   : > { %v1276_v56 = vpop.permute.xlu0 %1275 }
 0x280   : > { %v1589_v52 = vsel %vm1575_vm12, %v1556_v53, %v1276_v56  ;;  %v4603_v53 = vld [vmem:[#allocation85_spill] sm:$0xff] }
 0x281   : > { %2236 = vmatmul.mubr.msk.f32.gmra.mrb[12].mxu0 %vm1613_vm13, %v1589_v52  ;;  %v1409_v56 = vsel %vm1377_vm6, %v1376_v20, %v4603_v53  ;;  %v4604_v52 = vld [vmem:[#allocation12_spill] sm:$0xff] }
 0x282   : > { %v1009_v9 = vpop.permute.xlu1 %1008  ;;  %v1442_v59 = vsel %vm1410_vm7, %v1409_v56, %v4604_v52 }
 0x283   : > { %v979_v36 = vpop.permute.xlu0 %978  ;;  %v1507_v38 = vsel %vm1476_vm9, %v1474_v41, %v1009_v9  ;;  %v1475_v18 = vsel %vm1443_vm8, %v1442_v59, %v4186_v63 }
 0x284   : > { %v1492_v11 = vsel %vm1476_vm9, %v1459_v24, %v979_v36 }
 0x286   : > { %v1308_v42 = vpop.permute.xlu1 %1307 }
 0x287   : > { %v1605_v32 = vsel %vm1575_vm12, %v1572_v50, %v1308_v42  ;;  %v1075_v39 = vpop.permute.xlu0 %1074 }
 0x288   : > { %2260 = vmatmul.mubr.msk.f32.gmra.mrb[12].mxu1 %vm1613_vm13, %v1605_v32  ;;  %v1524_v46 = vsel %vm1509_vm10, %v1491_v2, %v1075_v39 }
 0x28a   : > { %v1011_v47 = vpop.permute.xlu1 %1010 }
 0x28b   : > { %v1077_v54 = vpop.permute.xlu0 %1076  ;;  %v1508_v57 = vsel %vm1476_vm9, %v1475_v18, %v1011_v47 }
 0x28c   : > { %v2222_v1 = vpop.f32.mrb[2].mxu0  ;;  %v1525_v23 = vsel %vm1509_vm10, %v1492_v11, %v1077_v54 }
 0x28d   : > { %v1790_v60 = vpop.f32.mrb[3].mxu0 }
 0x28e   : > { %v1107_v12 = vpop.permute.xlu1 %1106  ;;  %1941 = vxpose.xlu0.b32.cont [3/16] (narrow) %v1790_v60, 8 }
 0x28f   : > { %v1177_v22 = vpop.permute.xlu0 %1176  ;;  %v1540_v16 = vsel %vm1509_vm10, %v1507_v38, %v1107_v12 }
 0x290   : > { %v1557_v51 = vsel %vm1542_vm11, %v1524_v46, %v1177_v22 }
 0x292   : > { %v1109_v17 = vpop.permute.xlu1 %1108  ;;  %1942 = vxpose.xlu0.b32.cont [4/16] (narrow) %v2222_v1, 8 }
 0x293   : > { %v2246_v27 = vpop.f32.mrb[2].mxu1  ;;  %v1179_v5 = vpop.permute.xlu0 %1178  ;;  %v1541_v29 = vsel %vm1509_vm10, %v1508_v57, %v1109_v17 }
 0x294   : > { %v1870_v61 = vpop.f32.mrb[3].mxu1  ;;  %v1558_v13 = vsel %vm1542_vm11, %v1525_v23, %v1179_v5 }
 0x295   : > { %1973 = vxpose.xlu1.b32.cont [3/16] (narrow) %v1870_v61, 8 }
 0x296   : > { %v1209_v45 = vpop.permute.xlu1 %1208 }
 0x297   : > { %v1278_v6 = vpop.permute.xlu0 %1277  ;;  %v1573_v37 = vsel %vm1542_vm11, %v1540_v16, %v1209_v45 }
 0x298   : > { %v1590_v10 = vsel %vm1575_vm12, %v1557_v51, %v1278_v6 }
 0x299   : > { %1974 = vxpose.xlu1.b32.cont [4/16] (narrow) %v2246_v27, 8  ;;  %2238 = vmatprep.mubr.msk.f32.mxu0 %vm1613_vm13, %v1590_v10 }
 0x29a   : > { %v1211_v7 = vpop.permute.xlu1 %1210 }
 0x29b   : > { %v1280_v34 = vpop.permute.xlu0 %1279  ;;  %v1574_v36 = vsel %vm1542_vm11, %v1541_v29, %v1211_v7 }
 0x29c   : > { %v1591_v49 = vsel %vm1575_vm12, %v1558_v13, %v1280_v34 }
 0x29d   : > { %2239 = vmatmul.mubr.msk.f32.gmra.mrb[14].mxu0 %vm1613_vm13, %v1591_v49 }
 0x29e   : > { %v1310_v35 = vpop.permute.xlu1 %1309 }
 0x29f   : > { %v1606_v9 = vsel %vm1575_vm12, %v1573_v37, %v1310_v35 }
 0x2a0   : > { %2262 = vmatprep.mubr.msk.f32.mxu1 %vm1613_vm13, %v1606_v9 }
 0x2a2   : > { %v1312_v43 = vpop.permute.xlu1 %1311 }
 0x2a3   : > { %v1607_v50 = vsel %vm1575_vm12, %v1574_v36, %v1312_v43 }
 0x2a4   : > { %2263 = vmatmul.mubr.msk.f32.gmra.mrb[14].mxu1 %vm1613_vm13, %v1607_v50 }
 0x2b4   : > { %v2225_v42 = vpop.f32.mrb[4].mxu0 }
 0x2b5   : > { %v1800_v32 = vpop.f32.mrb[5].mxu0 }
 0x2b6   : > { %1943 = vxpose.xlu0.b32.cont [5/16] (narrow) %v1800_v32, 8 }
 0x2ba   : > { %1944 = vxpose.xlu0.b32.cont [6/16] (narrow) %v2225_v42, 8 }
 0x2bb   : > { %v2249_v63 = vpop.f32.mrb[4].mxu1 }
 0x2bc   : > { %v1880_v39 = vpop.f32.mrb[5].mxu1 }
 0x2bd   : > { %1975 = vxpose.xlu1.b32.cont [5/16] (narrow) %v1880_v39, 8 }
 0x2c1   : > { %1976 = vxpose.xlu1.b32.cont [6/16] (narrow) %v2249_v63, 8 }
 0x2dc   : > { %v2228_v47 = vpop.f32.mrb[6].mxu0 }
 0x2dd   : > { %v1810_v54 = vpop.f32.mrb[7].mxu0 }
 0x2de   : > { %1945 = vxpose.xlu0.b32.cont [7/16] (narrow) %v1810_v54, 8 }
 0x2e2   : > { %1946 = vxpose.xlu0.b32.cont [8/16] (narrow) %v2228_v47, 8 }
 0x2e3   : > { %v2252_v1 = vpop.f32.mrb[6].mxu1 }
 0x2e4   : > { %v1890_v60 = vpop.f32.mrb[7].mxu1 }
 0x2e5   : > { %1977 = vxpose.xlu1.b32.cont [7/16] (narrow) %v1890_v60, 8 }
 0x2e9   : > { %1978 = vxpose.xlu1.b32.cont [8/16] (narrow) %v2252_v1, 8 }
 0x304   : > { %v2231_v12 = vpop.f32.mrb[8].mxu0 }
 0x305   : > { %v1820_v22 = vpop.f32.mrb[9].mxu0 }
 0x306   : > { %1947 = vxpose.xlu0.b32.cont [9/16] (narrow) %v1820_v22, 8 }
 0x30a   : > { %1948 = vxpose.xlu0.b32.cont [10/16] (narrow) %v2231_v12, 8 }
 0x30b   : > { %v2255_v62 = vpop.f32.mrb[8].mxu1 }
 0x30c   : > { %v1900_v33 = vpop.f32.mrb[9].mxu1 }
 0x30d   : > { %1979 = vxpose.xlu1.b32.cont [9/16] (narrow) %v1900_v33, 8 }
 0x311   : > { %1980 = vxpose.xlu1.b32.cont [10/16] (narrow) %v2255_v62, 8 }
 0x32c   : > { %v2234_v17 = vpop.f32.mrb[10].mxu0 }
 0x32d   : > { %v1830_v30 = vpop.f32.mrb[11].mxu0 }
 0x32e   : > { %1949 = vxpose.xlu0.b32.cont [11/16] (narrow) %v1830_v30, 8 }
 0x332   : > { %1950 = vxpose.xlu0.b32.cont [12/16] (narrow) %v2234_v17, 8 }
 0x333   : > { %v2258_v25 = vpop.f32.mrb[10].mxu1 }
 0x334   : > { %v1910_v27 = vpop.f32.mrb[11].mxu1 }
 0x335   : > { %1981 = vxpose.xlu1.b32.cont [11/16] (narrow) %v1910_v27, 8 }
 0x339   : > { %1982 = vxpose.xlu1.b32.cont [12/16] (narrow) %v2258_v25, 8 }
 0x354   : > { %v2237_v48 = vpop.f32.mrb[12].mxu0 }
 0x355   : > { %v1840_v44 = vpop.f32.mrb[13].mxu0 }
 0x356   : > { %1951 = vxpose.xlu0.b32.cont [13/16] (narrow) %v1840_v44, 8 }
 0x35a   : > { %1952 = vxpose.xlu0.b32.cont [14/16] (narrow) %v2237_v48, 8 }
 0x35b   : > { %v2261_v5 = vpop.f32.mrb[12].mxu1 }
 0x35c   : > { %v1920_v61 = vpop.f32.mrb[13].mxu1 }
 0x35d   : > { %1983 = vxpose.xlu1.b32.cont [13/16] (narrow) %v1920_v61, 8 }
 0x361   : > { %1984 = vxpose.xlu1.b32.cont [14/16] (narrow) %v2261_v5, 8 }
 0x370   : > { %v2240_v14 = vpop.f32.mrb[14].mxu0 }
 0x371   : > { %v1850_v26 = vpop.f32.mrb[15].mxu0 }
 0x372   : > { %1953 = vxpose.xlu0.b32.cont [15/16] (narrow) %v1850_v26, 8 }
 0x376   : > { %1954 = vxpose.xlu0.b32.end [16/16] (narrow) %v2240_v14, 8 }
 0x377   : > { %v2264_v55 = vpop.f32.mrb[14].mxu1 }
 0x378   : > { %v1930_v2 = vpop.f32.mrb[15].mxu1 }
 0x379   : > { %1985 = vxpose.xlu1.b32.cont [15/16] (narrow) %v1930_v2, 8 }
 0x37d   : > { %1986 = vxpose.xlu1.b32.end [16/16] (narrow) %v2264_v55, 8 }
 0x3ba   : > { %v1955_v45 = vpop.trf.xlu0 }
 0x3bb   : > { %2003 = vst [vmem:[%s164_s5] sm:$0xff] %v1955_v45  ;;  %v2008_v21 = vmul.f32 %v1955_v45, %v1955_v45 }
 0x3c1   : > { %v1987_v4 = vpop.trf.xlu1 }
 0x3c2   : > { %2004 = vst [vmem:[%s164_s5 + $0x8] sm:$0xff] %v1987_v4  ;;  %v2005_v46 = vadd.f32 %v1987_v4, %v1955_v45  ;;  %v2009_v3 = vmul.f32 %v1987_v4, %v1987_v4 }
 0x3c4   : > { %2006 = vadd.xlane.f32.xlu0 %v2005_v46  ;;  %v2010_v19 = vadd.f32 %v2009_v3, %v2008_v21 }
 0x3c6   : > { %2011 = vadd.xlane.f32.xlu1 %v2010_v19 }
 0x3c7   : > { %2372 = shalt.err (!%p2369_p3)
}
 0x3c8   : > { %s2373_s16 = scalar_lea.hbm %s4265_s10, 256  ;;  %s2377_s28 = scalar_lea.hbm %s4307_s2, 512 }
 0x3c9   : > { %p2374_p4 = scmp.ne.s32.totalorder %s4265_s10, %s2373_s16  ;;  %p2378_p9 = scmp.lt.u32.totalorder %s4265_s10, %s4307_s2 }
 0x3ca   : > { %p2379_p10 = scmp.lt.u32.totalorder %s2377_s28, %s2373_s16  ;;  %p2381_p12 = scmp.lt.u32.totalorder %s2373_s16, %s4265_s10 }
 0x3cb   : > { %p2375_p7 = pnand %p2374_p4, %p2491_p5 }
 0x3cc   : > { %p2380_p11 = por %p2379_p10, %p2378_p9 }
 0x3cd   : > { %p2376_p8 = pneg %p2375_p7 }
 0x3ce   : > { %p2382_p13 = por %p2381_p12, %p2380_p11 }
 0x3d0   : > { %p2383_p0 = pnand %p2382_p13, %p2376_p8 }
 0x3d2   : > { %2386 = shalt.err (!%p2383_p0)
}
 0x3d3   : > { %2279 = dma.vmem_to_hbm [thread:$0]  (%p2491_p5), %s2037_s7, 256, %s4265_s10, %s2018_s11   ;;  %vm2013_vm14 = vcmask 7168   ;;  %vm2015_vm15 = vcmask 15360  }
 0x3d4   : > { %s2129_s4 = sshll.u32 %s2507_s24, 3 }
 0x3d5   : > { %s179_s8 = scalar_lea.vmem %s4308_s3, %s2129_s4 }
 0x451   : > { %v2007_v15 = vpop.xlane.xlu0 %2006 }
 0x453   : > { %v2012_v0 = vpop.xlane.xlu1 %2011 }
 0x454   : > { %v2014_v51 = vsel %vm2013_vm14, %v2007_v15, %v2012_v0 }
 0x455   : > { %2016 = vst.msk [vmem:[%s179_s8] sm:$0xff] %vm2015_vm15, %v2014_v51 }
 0x456 PF: > { %p2285_p1 = scmp.ge.s32.totalorder %s2421_s15, 2  ;;  %s2051_s22 = sand.u32 1, %s2409_s12  }
 0x457   : > { %s2052_s7 = scalar_lea.sflag [#allocation4], %s2051_s22 }
 0x458   : > { %p2282_p2 = pnand %p2285_p1, %p2495_p6 }
 0x45a   : > { %2404 = dma.done.wait (!%p2282_p2), %s2052_s7, 256  }
 0x45b   : > { %2406 = vsyncadd (!%p2282_p2), %s2052_s7, 4294967040  ;;  %p14_p5 = scmp.ge.s32.totalorder %s2478_s18, 4   ;;  %s4605_s12 = smov %s2413_s13 }
 0x45c   : > { %s4606_s13 = smov %s2417_s14  ;;  %s4607_s14 = smov %s2489_s21 }
 0x45d   : > { %s4608_s15 = smov %s2478_s18  ;;  %16 = sbr.rel (!%p14_p5) target bundleno = 3 (0x3), region = 77 }
 0x464   :  { %2064 = vsyncpa [#allocation4], 1 }
 0x465   :  { %2066 = vsyncpa [#allocation4 + $0x1], 1 }

</bundles_post_ra>
